<compile_context>
chip_gen: v7x
topology: tpu7x:2x2x1
jax: 0.10.0
libtpu: 0.0.40
codegen_flags: <defaults>
</compile_context>

<pallas_src>
import math

import jax
import jax.numpy as jnp
from jax.experimental import pallas as pl
from jax.experimental.pallas import tpu as pltpu


# ----------------------------------------------------------------------------
# Fused AdaptiveBlock kernel: one grid step = one (content, style) image pair.
# ----------------------------------------------------------------------------
def _make_block_kernel(c, h, w, lpad, eps=1e-5):
    hw = h * w
    inv_nm1 = 1.0 / float(hw - 1)                 # torch .var(dim=2) is unbiased
    taps = [(di, dj) for di in (-1, 0, 1) for dj in (-1, 0, 1)]

    def kernel(w1_ref, w2_ref, x_ref, o_ref, pad_ref):
        # w?_ref : (9, Cout, Cin) f32, tap-major 3x3 weights (VMEM resident)
        # x_ref  : (2, 1, C, HW)  -> [0]=content image, [1]=style image
        # o_ref  : (2, 1, C, HW)  -> [0]=adaptive half, [1]=style half
        # pad_ref: (C, 2*lpad+HW) f32 scratch: zero halo around the lane-aligned slab

        # Column-validity masks for dj = -1 / +1 taps (row over-runs hit the zero halo;
        # the two halo corner cases are exactly the column-masked positions).
        col = jax.lax.broadcasted_iota(jnp.int32, (c, hw), 1) % w
        mask_l = col != 0            # reading x[.., x-1] invalid at x == 0
        mask_r = col != (w - 1)      # reading x[.., x+1] invalid at x == W-1

        # Zero halo once per grid step; the slab center is fully overwritten per conv.
        pad_ref[...] = jnp.zeros_like(pad_ref)

        def conv3x3(img, wt_ref):
            # img: (C, HW) f32  ->  (Cout, HW) f32 via 9 shifted MXU matmuls.
            pad_ref[:, lpad:lpad + hw] = img          # lane-aligned, unmasked stores
            xp = pad_ref[...]                         # (C, 2*lpad+HW) f32
            acc = jnp.zeros((c, hw), jnp.float32)
            for t, (di, dj) in enumerate(taps):
                start = lpad + di * w + dj            # static lane offset
                shifted = xp[:, start:start + hw]     # (Cin, HW)
                if dj == -1:
                    shifted = jnp.where(mask_l, shifted, 0.0)
                elif dj == 1:
                    shifted = jnp.where(mask_r, shifted, 0.0)
                acc = acc + jnp.dot(wt_ref[t], shifted,
                                    preferred_element_type=jnp.float32)
            return acc

        def adain(content, style):
            # Per-channel stats over HW lanes (unbiased variance, eps inside sqrt).
            c_mean = jnp.mean(content, axis=-1, keepdims=True)
            s_mean = jnp.mean(style, axis=-1, keepdims=True)
            c_var = jnp.sum((content - c_mean) ** 2, axis=-1, keepdims=True) * inv_nm1
            s_var = jnp.sum((style - s_mean) ** 2, axis=-1, keepdims=True) * inv_nm1
            # rsqrt-multiply: fold both per-channel scalars before the (C, HW) broadcast.
            scale = jax.lax.rsqrt(c_var + eps) * jnp.sqrt(s_var + eps)
            return (content - c_mean) * scale + s_mean

        xc = x_ref[0, 0].astype(jnp.float32)          # content image (C, HW)
        xs = x_ref[1, 0].astype(jnp.float32)          # style image   (C, HW)

        # conv1 -> AdaIN -> ReLU (both halves)
        c1 = conv3x3(xc, w1_ref)
        s1 = conv3x3(xs, w1_ref)
        a1 = jnp.maximum(adain(c1, s1), 0.0)
        s1 = jnp.maximum(s1, 0.0)

        # conv2 -> AdaIN -> + identity shortcut -> ReLU
        c2 = conv3x3(a1, w2_ref)
        s2 = conv3x3(s1, w2_ref)
        a2 = adain(c2, s2)
        o_ref[0, 0] = jnp.maximum(a2 + xc, 0.0).astype(o_ref.dtype)
        o_ref[1, 0] = jnp.maximum(s2 + xs, 0.0).astype(o_ref.dtype)

    return kernel


# ----------------------------------------------------------------------------
# Wrapper: AdaptiveBlock forward (stride=1, in_planes == planes).
# ----------------------------------------------------------------------------
def adaptive_block_forward(x, w1, w2):
    """x: (B, C, H, W); w1/w2: (C, C, 3, 3) -> (B, C, H, W)."""
    b, c, h, w = x.shape
    assert b % 2 == 0, "Adain needs an even batch (content half / style half)"
    assert h * w > 1
    assert w1.shape == (c, c, 3, 3) and w2.shape == (c, c, 3, 3), (
        "identity-shortcut config only (in_planes == planes, stride == 1)")
    # TODO(synk): projection shortcut (1x1 conv + BatchNorm2d) for stride != 1 or
    # in_planes != planes is not implemented; identity-shortcut config only.

    half = b // 2
    hw = h * w
    lpad = ((w + 1 + 127) // 128) * 128          # lane-aligned halo width >= W+1
    padw = 2 * lpad + hw

    # Contiguous (free) reshapes: batch split into (content, style) groups, spatial
    # flattened to a lane-dense HW axis.
    x4 = x.reshape(2, half, c, hw)
    # Tap-major weights (9, Cout, Cin); tiny, kept resident in VMEM.
    w1t = jnp.transpose(w1.reshape(c, c, 9), (2, 0, 1)).astype(jnp.float32)
    w2t = jnp.transpose(w2.reshape(c, c, 9), (2, 0, 1)).astype(jnp.float32)

    # Per-step VMEM footprint is tiny (a few tens of KiB double-buffered), so no
    # explicit vmem_limit_bytes is needed even under v7x's 64 MiB physical VMEM.
    out4 = pl.pallas_call(
        _make_block_kernel(c, h, w, lpad),
        out_shape=jax.ShapeDtypeStruct((2, half, c, hw), x.dtype),
        grid=(half,),
        in_specs=[
            pl.BlockSpec((9, c, c), lambda i: (0, 0, 0)),          # w1 (resident)
            pl.BlockSpec((9, c, c), lambda i: (0, 0, 0)),          # w2 (resident)
            pl.BlockSpec((2, 1, c, hw), lambda i: (0, i, 0, 0)),   # content+style pair
        ],
        out_specs=pl.BlockSpec((2, 1, c, hw), lambda i: (0, i, 0, 0)),
        scratch_shapes=[pltpu.VMEM((c, padw), jnp.float32)],
        compiler_params=pltpu.CompilerParams(dimension_semantics=("parallel",)),
    )(w1t, w2t, x4)

    # Group 0 = adaptive half, group 1 = style half -> contiguous reshape back to batch.
    return out4.reshape(b, c, h, w)


# ----------------------------------------------------------------------------
# Pure-JAX reference (mirrors the PyTorch module) for the correctness check.
# ----------------------------------------------------------------------------
def _adain_ref(feat, eps=1e-5):
    half = feat.shape[0] // 2
    content, style = feat[:half], feat[half:]

    def mean_std(f):
        n, ch = f.shape[:2]
        ff = f.reshape(n, ch, -1)
        std = jnp.sqrt(jnp.var(ff, axis=2, ddof=1) + eps).reshape(n, ch, 1, 1)
        mean = jnp.mean(ff, axis=2).reshape(n, ch, 1, 1)
        return mean, std

    s_mean, s_std = mean_std(style)
    c_mean, c_std = mean_std(content)
    adaptive = (content - c_mean) / c_std * s_std + s_mean
    return jnp.concatenate([adaptive, style], axis=0)


def _ref_forward(x, w1, w2):
    def conv(inp, wt):
        return jax.lax.conv_general_dilated(
            inp, wt, window_strides=(1, 1), padding=((1, 1), (1, 1)),
            dimension_numbers=("NCHW", "OIHW", "NCHW"))

    out = jax.nn.relu(_adain_ref(conv(x, w1)))
    out = _adain_ref(conv(out, w2))
    return jax.nn.relu(out + x)


if __name__ == "__main__":
    # AdaptiveBlock(in_planes=4, planes=4, stride=1) -> identity shortcut.
    B, C, H, W = 2, 4, 16, 16

    key = jax.random.PRNGKey(0)
    kx, k1, k2 = jax.random.split(key, 3)
    x = jax.random.normal(kx, (B, C, H, W), dtype=jnp.float32)
    fan_in = C * 9
    w1 = jax.random.normal(k1, (C, C, 3, 3), dtype=jnp.float32) / math.sqrt(fan_in)
    w2 = jax.random.normal(k2, (C, C, 3, 3), dtype=jnp.float32) / math.sqrt(fan_in)

    out = jax.jit(adaptive_block_forward)(x, w1, w2)
    out = jax.block_until_ready(out)

    ref = _ref_forward(x, w1, w2)
    assert out.shape == (B, C, H, W)
    err = float(jnp.max(jnp.abs(out - ref)))
    assert jnp.allclose(out, ref, atol=1e-4, rtol=1e-4), err

    print("KERNEL_OK")
</pallas_src>

<mosaic_0001>
module attributes {stable_mosaic.version = 11 : i64} {
  func.func @kernel(%arg0: i32, %arg1: memref<9x4x4xf32, #tpu.memory_space<vmem>>, %arg2: memref<9x4x4xf32, #tpu.memory_space<vmem>>, %arg3: memref<2x1x4x256xf32, #tpu.memory_space<vmem>>, %arg4: memref<2x1x4x256xf32, #tpu.memory_space<vmem>>, %arg5: memref<4x512xf32, #tpu.memory_space<vmem>>) attributes {dimension_semantics = [#tpu.dimension_semantics<parallel>], iteration_bounds = array<i64: 1>, scalar_prefetch = 0 : i64, scratch_operands = 1 : i64, tpu.core_type = #tpu.core_type<tc>, window_params = [{pipeline_mode = #tpu.pipeline_mode<synchronous>, transform_indices = @transform_0, window_bounds = array<i64: 9, 4, 4>}, {pipeline_mode = #tpu.pipeline_mode<synchronous>, transform_indices = @transform_1, window_bounds = array<i64: 9, 4, 4>}, {transform_indices = @transform_2, window_bounds = array<i64: 2, 1, 4, 256>}, {transform_indices = @transform_3, window_bounds = array<i64: 2, 1, 4, 256>}]} {
    %0 = tpu.iota {dimensions = array<i32: 1>} : vector<4x256xi32>
    %c16_i32 = arith.constant 16 : i32
    %c0_i32 = arith.constant 0 : i32
    %1 = arith.cmpi eq, %c16_i32, %c0_i32 : i32
    %c1_i32 = arith.constant 1 : i32
    %2 = arith.select %1, %c1_i32, %c16_i32 : i32
    %3 = vector.broadcast %2 : i32 to vector<4x256xi32>
    %4 = arith.remsi %0, %3 : vector<4x256xi32>
    %c0_i32_0 = arith.constant 0 : i32
    %5 = vector.broadcast %c0_i32_0 : i32 to vector<4x256xi32>
    %6 = arith.cmpi ne, %4, %5 : vector<4x256xi32>
    %c0_i32_1 = arith.constant 0 : i32
    %7 = vector.broadcast %c0_i32_1 : i32 to vector<4x256xi32>
    %8 = arith.cmpi slt, %4, %7 : vector<4x256xi32>
    %c0_i32_2 = arith.constant 0 : i32
    %9 = arith.cmpi slt, %2, %c0_i32_2 : i32
    %10 = vector.broadcast %9 : i1 to vector<4x256xi1>
    %11 = vector.broadcast %10 : vector<4x256xi1> to vector<4x256xi1>
    %12 = arith.xori %8, %11 : vector<4x256xi1>
    %13 = arith.andi %12, %6 : vector<4x256xi1>
    %14 = vector.broadcast %2 : i32 to vector<4x256xi32>
    %15 = arith.addi %4, %14 : vector<4x256xi32>
    %16 = arith.select %13, %15, %4 : vector<4x256xi1>, vector<4x256xi32>
    %c0_i32_3 = arith.constant 0 : i32
    %17 = vector.broadcast %c0_i32_3 : i32 to vector<4x256xi32>
    %18 = arith.cmpi ne, %16, %17 : vector<4x256xi32>
    %c15_i32 = arith.constant 15 : i32
    %19 = vector.broadcast %c15_i32 : i32 to vector<4x256xi32>
    %20 = arith.cmpi ne, %16, %19 : vector<4x256xi32>
    %cst = arith.constant 0.000000e+00 : f32
    %21 = vector.broadcast %cst : f32 to vector<4x512xf32>
    %c0 = arith.constant 0 : index
    %c0_4 = arith.constant 0 : index
    %22 = vector.load %arg5[%c0, %c0_4] : memref<4x512xf32, #tpu.memory_space<vmem>>, vector<4x512xf32>
    tpu.vector_store %arg5[%c0, %c0_4], %21 {strides = array<i32>} : memref<4x512xf32, #tpu.memory_space<vmem>>, vector<4x512xf32>,
    %c0_5 = arith.constant 0 : index
    %c0_6 = arith.constant 0 : index
    %c0_7 = arith.constant 0 : index
    %c0_8 = arith.constant 0 : index
    %23 = vector.load %arg3[%c0_5, %c0_6, %c0_7, %c0_8] : memref<2x1x4x256xf32, #tpu.memory_space<vmem>>, vector<1x1x4x256xf32>
    %24 = vector.shape_cast %23 : vector<1x1x4x256xf32> to vector<4x256xf32>
    %c1 = arith.constant 1 : index
    %c0_9 = arith.constant 0 : index
    %c0_10 = arith.constant 0 : index
    %c0_11 = arith.constant 0 : index
    %25 = vector.load %arg3[%c1, %c0_9, %c0_10, %c0_11] : memref<2x1x4x256xf32, #tpu.memory_space<vmem>>, vector<1x1x4x256xf32>
    %26 = vector.shape_cast %25 : vector<1x1x4x256xf32> to vector<4x256xf32>
    %c0_12 = arith.constant 0 : index
    %c128 = arith.constant 128 : index
    %27 = vector.load %arg5[%c0_12, %c128] : memref<4x512xf32, #tpu.memory_space<vmem>>, vector<4x256xf32>
    tpu.vector_store %arg5[%c0_12, %c128], %24 {strides = array<i32>} : memref<4x512xf32, #tpu.memory_space<vmem>>, vector<4x256xf32>,
    %c0_13 = arith.constant 0 : index
    %c0_14 = arith.constant 0 : index
    %28 = vector.load %arg5[%c0_13, %c0_14] : memref<4x512xf32, #tpu.memory_space<vmem>>, vector<4x512xf32>
    %cst_15 = arith.constant 0.000000e+00 : f32
    %29 = vector.broadcast %cst_15 : f32 to vector<4x256xf32>
    %30 = vector.extract_strided_slice %28 {offsets = [0, 111], sizes = [4, 256], strides = [1, 1]} : vector<4x512xf32> to vector<4x256xf32>
    %cst_16 = arith.constant 0.000000e+00 : f32
    %31 = vector.broadcast %cst_16 : f32 to vector<4x256xf32>
    %32 = arith.select %18, %30, %31 : vector<4x256xi1>, vector<4x256xf32>
    %c0_17 = arith.constant 0 : index
    %c0_18 = arith.constant 0 : index
    %c0_19 = arith.constant 0 : index
    %33 = vector.load %arg1[%c0_17, %c0_18, %c0_19] : memref<9x4x4xf32, #tpu.memory_space<vmem>>, vector<1x4x4xf32>
    %34 = vector.shape_cast %33 : vector<1x4x4xf32> to vector<4x4xf32>
    %cst_20 = arith.constant dense<0.000000e+00> : vector<4x256xf32>
    %35 = tpu.matmul %34, %32, %cst_20 {dimension_numbers = #tpu.dot_dimension_numbers<[1], [0], [0], [1], [0, 0, 1, 1], [], []>} : vector<4x4xf32>, vector<4x256xf32>, vector<4x256xf32> -> vector<4x256xf32>
    %36 = arith.addf %29, %35 : vector<4x256xf32>
    %37 = vector.extract_strided_slice %28 {offsets = [0, 112], sizes = [4, 256], strides = [1, 1]} : vector<4x512xf32> to vector<4x256xf32>
    %c1_21 = arith.constant 1 : index
    %c0_22 = arith.constant 0 : index
    %c0_23 = arith.constant 0 : index
    %38 = vector.load %arg1[%c1_21, %c0_22, %c0_23] : memref<9x4x4xf32, #tpu.memory_space<vmem>>, vector<1x4x4xf32>
    %39 = vector.shape_cast %38 : vector<1x4x4xf32> to vector<4x4xf32>
    %cst_24 = arith.constant dense<0.000000e+00> : vector<4x256xf32>
    %40 = tpu.matmul %39, %37, %cst_24 {dimension_numbers = #tpu.dot_dimension_numbers<[1], [0], [0], [1], [0, 0, 1, 1], [], []>} : vector<4x4xf32>, vector<4x256xf32>, vector<4x256xf32> -> vector<4x256xf32>
    %41 = arith.addf %36, %40 : vector<4x256xf32>
    %42 = vector.extract_strided_slice %28 {offsets = [0, 113], sizes = [4, 256], strides = [1, 1]} : vector<4x512xf32> to vector<4x256xf32>
    %cst_25 = arith.constant 0.000000e+00 : f32
    %43 = vector.broadcast %cst_25 : f32 to vector<4x256xf32>
    %44 = arith.select %20, %42, %43 : vector<4x256xi1>, vector<4x256xf32>
    %c2 = arith.constant 2 : index
    %c0_26 = arith.constant 0 : index
    %c0_27 = arith.constant 0 : index
    %45 = vector.load %arg1[%c2, %c0_26, %c0_27] : memref<9x4x4xf32, #tpu.memory_space<vmem>>, vector<1x4x4xf32>
    %46 = vector.shape_cast %45 : vector<1x4x4xf32> to vector<4x4xf32>
    %cst_28 = arith.constant dense<0.000000e+00> : vector<4x256xf32>
    %47 = tpu.matmul %46, %44, %cst_28 {dimension_numbers = #tpu.dot_dimension_numbers<[1], [0], [0], [1], [0, 0, 1, 1], [], []>} : vector<4x4xf32>, vector<4x256xf32>, vector<4x256xf32> -> vector<4x256xf32>
    %48 = arith.addf %41, %47 : vector<4x256xf32>
    %49 = vector.extract_strided_slice %28 {offsets = [0, 127], sizes = [4, 256], strides = [1, 1]} : vector<4x512xf32> to vector<4x256xf32>
    %cst_29 = arith.constant 0.000000e+00 : f32
    %50 = vector.broadcast %cst_29 : f32 to vector<4x256xf32>
    %51 = arith.select %18, %49, %50 : vector<4x256xi1>, vector<4x256xf32>
    %c3 = arith.constant 3 : index
    %c0_30 = arith.constant 0 : index
    %c0_31 = arith.constant 0 : index
    %52 = vector.load %arg1[%c3, %c0_30, %c0_31] : memref<9x4x4xf32, #tpu.memory_space<vmem>>, vector<1x4x4xf32>
    %53 = vector.shape_cast %52 : vector<1x4x4xf32> to vector<4x4xf32>
    %cst_32 = arith.constant dense<0.000000e+00> : vector<4x256xf32>
    %54 = tpu.matmul %53, %51, %cst_32 {dimension_numbers = #tpu.dot_dimension_numbers<[1], [0], [0], [1], [0, 0, 1, 1], [], []>} : vector<4x4xf32>, vector<4x256xf32>, vector<4x256xf32> -> vector<4x256xf32>
    %55 = arith.addf %48, %54 : vector<4x256xf32>
    %56 = vector.extract_strided_slice %28 {offsets = [0, 128], sizes = [4, 256], strides = [1, 1]} : vector<4x512xf32> to vector<4x256xf32>
    %c4 = arith.constant 4 : index
    %c0_33 = arith.constant 0 : index
    %c0_34 = arith.constant 0 : index
    %57 = vector.load %arg1[%c4, %c0_33, %c0_34] : memref<9x4x4xf32, #tpu.memory_space<vmem>>, vector<1x4x4xf32>
    %58 = vector.shape_cast %57 : vector<1x4x4xf32> to vector<4x4xf32>
    %cst_35 = arith.constant dense<0.000000e+00> : vector<4x256xf32>
    %59 = tpu.matmul %58, %56, %cst_35 {dimension_numbers = #tpu.dot_dimension_numbers<[1], [0], [0], [1], [0, 0, 1, 1], [], []>} : vector<4x4xf32>, vector<4x256xf32>, vector<4x256xf32> -> vector<4x256xf32>
    %60 = arith.addf %55, %59 : vector<4x256xf32>
    %61 = vector.extract_strided_slice %28 {offsets = [0, 129], sizes = [4, 256], strides = [1, 1]} : vector<4x512xf32> to vector<4x256xf32>
    %cst_36 = arith.constant 0.000000e+00 : f32
    %62 = vector.broadcast %cst_36 : f32 to vector<4x256xf32>
    %63 = arith.select %20, %61, %62 : vector<4x256xi1>, vector<4x256xf32>
    %c5 = arith.constant 5 : index
    %c0_37 = arith.constant 0 : index
    %c0_38 = arith.constant 0 : index
    %64 = vector.load %arg1[%c5, %c0_37, %c0_38] : memref<9x4x4xf32, #tpu.memory_space<vmem>>, vector<1x4x4xf32>
    %65 = vector.shape_cast %64 : vector<1x4x4xf32> to vector<4x4xf32>
    %cst_39 = arith.constant dense<0.000000e+00> : vector<4x256xf32>
    %66 = tpu.matmul %65, %63, %cst_39 {dimension_numbers = #tpu.dot_dimension_numbers<[1], [0], [0], [1], [0, 0, 1, 1], [], []>} : vector<4x4xf32>, vector<4x256xf32>, vector<4x256xf32> -> vector<4x256xf32>
    %67 = arith.addf %60, %66 : vector<4x256xf32>
    %68 = vector.extract_strided_slice %28 {offsets = [0, 143], sizes = [4, 256], strides = [1, 1]} : vector<4x512xf32> to vector<4x256xf32>
    %cst_40 = arith.constant 0.000000e+00 : f32
    %69 = vector.broadcast %cst_40 : f32 to vector<4x256xf32>
    %70 = arith.select %18, %68, %69 : vector<4x256xi1>, vector<4x256xf32>
    %c6 = arith.constant 6 : index
    %c0_41 = arith.constant 0 : index
    %c0_42 = arith.constant 0 : index
    %71 = vector.load %arg1[%c6, %c0_41, %c0_42] : memref<9x4x4xf32, #tpu.memory_space<vmem>>, vector<1x4x4xf32>
    %72 = vector.shape_cast %71 : vector<1x4x4xf32> to vector<4x4xf32>
    %cst_43 = arith.constant dense<0.000000e+00> : vector<4x256xf32>
    %73 = tpu.matmul %72, %70, %cst_43 {dimension_numbers = #tpu.dot_dimension_numbers<[1], [0], [0], [1], [0, 0, 1, 1], [], []>} : vector<4x4xf32>, vector<4x256xf32>, vector<4x256xf32> -> vector<4x256xf32>
    %74 = arith.addf %67, %73 : vector<4x256xf32>
    %75 = vector.extract_strided_slice %28 {offsets = [0, 144], sizes = [4, 256], strides = [1, 1]} : vector<4x512xf32> to vector<4x256xf32>
    %c7 = arith.constant 7 : index
    %c0_44 = arith.constant 0 : index
    %c0_45 = arith.constant 0 : index
    %76 = vector.load %arg1[%c7, %c0_44, %c0_45] : memref<9x4x4xf32, #tpu.memory_space<vmem>>, vector<1x4x4xf32>
    %77 = vector.shape_cast %76 : vector<1x4x4xf32> to vector<4x4xf32>
    %cst_46 = arith.constant dense<0.000000e+00> : vector<4x256xf32>
    %78 = tpu.matmul %77, %75, %cst_46 {dimension_numbers = #tpu.dot_dimension_numbers<[1], [0], [0], [1], [0, 0, 1, 1], [], []>} : vector<4x4xf32>, vector<4x256xf32>, vector<4x256xf32> -> vector<4x256xf32>
    %79 = arith.addf %74, %78 : vector<4x256xf32>
    %80 = vector.extract_strided_slice %28 {offsets = [0, 145], sizes = [4, 256], strides = [1, 1]} : vector<4x512xf32> to vector<4x256xf32>
    %cst_47 = arith.constant 0.000000e+00 : f32
    %81 = vector.broadcast %cst_47 : f32 to vector<4x256xf32>
    %82 = arith.select %20, %80, %81 : vector<4x256xi1>, vector<4x256xf32>
    %c8 = arith.constant 8 : index
    %c0_48 = arith.constant 0 : index
    %c0_49 = arith.constant 0 : index
    %83 = vector.load %arg1[%c8, %c0_48, %c0_49] : memref<9x4x4xf32, #tpu.memory_space<vmem>>, vector<1x4x4xf32>
    %84 = vector.shape_cast %83 : vector<1x4x4xf32> to vector<4x4xf32>
    %cst_50 = arith.constant dense<0.000000e+00> : vector<4x256xf32>
    %85 = tpu.matmul %84, %82, %cst_50 {dimension_numbers = #tpu.dot_dimension_numbers<[1], [0], [0], [1], [0, 0, 1, 1], [], []>} : vector<4x4xf32>, vector<4x256xf32>, vector<4x256xf32> -> vector<4x256xf32>
    %86 = arith.addf %79, %85 : vector<4x256xf32>
    %c0_51 = arith.constant 0 : index
    %c128_52 = arith.constant 128 : index
    %87 = vector.load %arg5[%c0_51, %c128_52] : memref<4x512xf32, #tpu.memory_space<vmem>>, vector<4x256xf32>
    tpu.vector_store %arg5[%c0_51, %c128_52], %26 {strides = array<i32>} : memref<4x512xf32, #tpu.memory_space<vmem>>, vector<4x256xf32>,
    %c0_53 = arith.constant 0 : index
    %c0_54 = arith.constant 0 : index
    %88 = vector.load %arg5[%c0_53, %c0_54] : memref<4x512xf32, #tpu.memory_space<vmem>>, vector<4x512xf32>
    %cst_55 = arith.constant 0.000000e+00 : f32
    %89 = vector.broadcast %cst_55 : f32 to vector<4x256xf32>
    %90 = vector.extract_strided_slice %88 {offsets = [0, 111], sizes = [4, 256], strides = [1, 1]} : vector<4x512xf32> to vector<4x256xf32>
    %cst_56 = arith.constant 0.000000e+00 : f32
    %91 = vector.broadcast %cst_56 : f32 to vector<4x256xf32>
    %92 = arith.select %18, %90, %91 : vector<4x256xi1>, vector<4x256xf32>
    %c0_57 = arith.constant 0 : index
    %c0_58 = arith.constant 0 : index
    %c0_59 = arith.constant 0 : index
    %93 = vector.load %arg1[%c0_57, %c0_58, %c0_59] : memref<9x4x4xf32, #tpu.memory_space<vmem>>, vector<1x4x4xf32>
    %94 = vector.shape_cast %93 : vector<1x4x4xf32> to vector<4x4xf32>
    %cst_60 = arith.constant dense<0.000000e+00> : vector<4x256xf32>
    %95 = tpu.matmul %94, %92, %cst_60 {dimension_numbers = #tpu.dot_dimension_numbers<[1], [0], [0], [1], [0, 0, 1, 1], [], []>} : vector<4x4xf32>, vector<4x256xf32>, vector<4x256xf32> -> vector<4x256xf32>
    %96 = arith.addf %89, %95 : vector<4x256xf32>
    %97 = vector.extract_strided_slice %88 {offsets = [0, 112], sizes = [4, 256], strides = [1, 1]} : vector<4x512xf32> to vector<4x256xf32>
    %c1_61 = arith.constant 1 : index
    %c0_62 = arith.constant 0 : index
    %c0_63 = arith.constant 0 : index
    %98 = vector.load %arg1[%c1_61, %c0_62, %c0_63] : memref<9x4x4xf32, #tpu.memory_space<vmem>>, vector<1x4x4xf32>
    %99 = vector.shape_cast %98 : vector<1x4x4xf32> to vector<4x4xf32>
    %cst_64 = arith.constant dense<0.000000e+00> : vector<4x256xf32>
    %100 = tpu.matmul %99, %97, %cst_64 {dimension_numbers = #tpu.dot_dimension_numbers<[1], [0], [0], [1], [0, 0, 1, 1], [], []>} : vector<4x4xf32>, vector<4x256xf32>, vector<4x256xf32> -> vector<4x256xf32>
    %101 = arith.addf %96, %100 : vector<4x256xf32>
    %102 = vector.extract_strided_slice %88 {offsets = [0, 113], sizes = [4, 256], strides = [1, 1]} : vector<4x512xf32> to vector<4x256xf32>
    %cst_65 = arith.constant 0.000000e+00 : f32
    %103 = vector.broadcast %cst_65 : f32 to vector<4x256xf32>
    %104 = arith.select %20, %102, %103 : vector<4x256xi1>, vector<4x256xf32>
    %c2_66 = arith.constant 2 : index
    %c0_67 = arith.constant 0 : index
    %c0_68 = arith.constant 0 : index
    %105 = vector.load %arg1[%c2_66, %c0_67, %c0_68] : memref<9x4x4xf32, #tpu.memory_space<vmem>>, vector<1x4x4xf32>
    %106 = vector.shape_cast %105 : vector<1x4x4xf32> to vector<4x4xf32>
    %cst_69 = arith.constant dense<0.000000e+00> : vector<4x256xf32>
    %107 = tpu.matmul %106, %104, %cst_69 {dimension_numbers = #tpu.dot_dimension_numbers<[1], [0], [0], [1], [0, 0, 1, 1], [], []>} : vector<4x4xf32>, vector<4x256xf32>, vector<4x256xf32> -> vector<4x256xf32>
    %108 = arith.addf %101, %107 : vector<4x256xf32>
    %109 = vector.extract_strided_slice %88 {offsets = [0, 127], sizes = [4, 256], strides = [1, 1]} : vector<4x512xf32> to vector<4x256xf32>
    %cst_70 = arith.constant 0.000000e+00 : f32
    %110 = vector.broadcast %cst_70 : f32 to vector<4x256xf32>
    %111 = arith.select %18, %109, %110 : vector<4x256xi1>, vector<4x256xf32>
    %c3_71 = arith.constant 3 : index
    %c0_72 = arith.constant 0 : index
    %c0_73 = arith.constant 0 : index
    %112 = vector.load %arg1[%c3_71, %c0_72, %c0_73] : memref<9x4x4xf32, #tpu.memory_space<vmem>>, vector<1x4x4xf32>
    %113 = vector.shape_cast %112 : vector<1x4x4xf32> to vector<4x4xf32>
    %cst_74 = arith.constant dense<0.000000e+00> : vector<4x256xf32>
    %114 = tpu.matmul %113, %111, %cst_74 {dimension_numbers = #tpu.dot_dimension_numbers<[1], [0], [0], [1], [0, 0, 1, 1], [], []>} : vector<4x4xf32>, vector<4x256xf32>, vector<4x256xf32> -> vector<4x256xf32>
    %115 = arith.addf %108, %114 : vector<4x256xf32>
    %116 = vector.extract_strided_slice %88 {offsets = [0, 128], sizes = [4, 256], strides = [1, 1]} : vector<4x512xf32> to vector<4x256xf32>
    %c4_75 = arith.constant 4 : index
    %c0_76 = arith.constant 0 : index
    %c0_77 = arith.constant 0 : index
    %117 = vector.load %arg1[%c4_75, %c0_76, %c0_77] : memref<9x4x4xf32, #tpu.memory_space<vmem>>, vector<1x4x4xf32>
    %118 = vector.shape_cast %117 : vector<1x4x4xf32> to vector<4x4xf32>
    %cst_78 = arith.constant dense<0.000000e+00> : vector<4x256xf32>
    %119 = tpu.matmul %118, %116, %cst_78 {dimension_numbers = #tpu.dot_dimension_numbers<[1], [0], [0], [1], [0, 0, 1, 1], [], []>} : vector<4x4xf32>, vector<4x256xf32>, vector<4x256xf32> -> vector<4x256xf32>
    %120 = arith.addf %115, %119 : vector<4x256xf32>
    %121 = vector.extract_strided_slice %88 {offsets = [0, 129], sizes = [4, 256], strides = [1, 1]} : vector<4x512xf32> to vector<4x256xf32>
    %cst_79 = arith.constant 0.000000e+00 : f32
    %122 = vector.broadcast %cst_79 : f32 to vector<4x256xf32>
    %123 = arith.select %20, %121, %122 : vector<4x256xi1>, vector<4x256xf32>
    %c5_80 = arith.constant 5 : index
    %c0_81 = arith.constant 0 : index
    %c0_82 = arith.constant 0 : index
    %124 = vector.load %arg1[%c5_80, %c0_81, %c0_82] : memref<9x4x4xf32, #tpu.memory_space<vmem>>, vector<1x4x4xf32>
    %125 = vector.shape_cast %124 : vector<1x4x4xf32> to vector<4x4xf32>
    %cst_83 = arith.constant dense<0.000000e+00> : vector<4x256xf32>
    %126 = tpu.matmul %125, %123, %cst_83 {dimension_numbers = #tpu.dot_dimension_numbers<[1], [0], [0], [1], [0, 0, 1, 1], [], []>} : vector<4x4xf32>, vector<4x256xf32>, vector<4x256xf32> -> vector<4x256xf32>
    %127 = arith.addf %120, %126 : vector<4x256xf32>
    %128 = vector.extract_strided_slice %88 {offsets = [0, 143], sizes = [4, 256], strides = [1, 1]} : vector<4x512xf32> to vector<4x256xf32>
    %cst_84 = arith.constant 0.000000e+00 : f32
    %129 = vector.broadcast %cst_84 : f32 to vector<4x256xf32>
    %130 = arith.select %18, %128, %129 : vector<4x256xi1>, vector<4x256xf32>
    %c6_85 = arith.constant 6 : index
    %c0_86 = arith.constant 0 : index
    %c0_87 = arith.constant 0 : index
    %131 = vector.load %arg1[%c6_85, %c0_86, %c0_87] : memref<9x4x4xf32, #tpu.memory_space<vmem>>, vector<1x4x4xf32>
    %132 = vector.shape_cast %131 : vector<1x4x4xf32> to vector<4x4xf32>
    %cst_88 = arith.constant dense<0.000000e+00> : vector<4x256xf32>
    %133 = tpu.matmul %132, %130, %cst_88 {dimension_numbers = #tpu.dot_dimension_numbers<[1], [0], [0], [1], [0, 0, 1, 1], [], []>} : vector<4x4xf32>, vector<4x256xf32>, vector<4x256xf32> -> vector<4x256xf32>
    %134 = arith.addf %127, %133 : vector<4x256xf32>
    %135 = vector.extract_strided_slice %88 {offsets = [0, 144], sizes = [4, 256], strides = [1, 1]} : vector<4x512xf32> to vector<4x256xf32>
    %c7_89 = arith.constant 7 : index
    %c0_90 = arith.constant 0 : index
    %c0_91 = arith.constant 0 : index
    %136 = vector.load %arg1[%c7_89, %c0_90, %c0_91] : memref<9x4x4xf32, #tpu.memory_space<vmem>>, vector<1x4x4xf32>
    %137 = vector.shape_cast %136 : vector<1x4x4xf32> to vector<4x4xf32>
    %cst_92 = arith.constant dense<0.000000e+00> : vector<4x256xf32>
    %138 = tpu.matmul %137, %135, %cst_92 {dimension_numbers = #tpu.dot_dimension_numbers<[1], [0], [0], [1], [0, 0, 1, 1], [], []>} : vector<4x4xf32>, vector<4x256xf32>, vector<4x256xf32> -> vector<4x256xf32>
    %139 = arith.addf %134, %138 : vector<4x256xf32>
    %140 = vector.extract_strided_slice %88 {offsets = [0, 145], sizes = [4, 256], strides = [1, 1]} : vector<4x512xf32> to vector<4x256xf32>
    %cst_93 = arith.constant 0.000000e+00 : f32
    %141 = vector.broadcast %cst_93 : f32 to vector<4x256xf32>
    %142 = arith.select %20, %140, %141 : vector<4x256xi1>, vector<4x256xf32>
    %c8_94 = arith.constant 8 : index
    %c0_95 = arith.constant 0 : index
    %c0_96 = arith.constant 0 : index
    %143 = vector.load %arg1[%c8_94, %c0_95, %c0_96] : memref<9x4x4xf32, #tpu.memory_space<vmem>>, vector<1x4x4xf32>
    %144 = vector.shape_cast %143 : vector<1x4x4xf32> to vector<4x4xf32>
    %cst_97 = arith.constant dense<0.000000e+00> : vector<4x256xf32>
    %145 = tpu.matmul %144, %142, %cst_97 {dimension_numbers = #tpu.dot_dimension_numbers<[1], [0], [0], [1], [0, 0, 1, 1], [], []>} : vector<4x4xf32>, vector<4x256xf32>, vector<4x256xf32> -> vector<4x256xf32>
    %146 = arith.addf %139, %145 : vector<4x256xf32>
    %cst_98 = arith.constant dense<0.000000e+00> : vector<4xf32>
    %147 = vector.multi_reduction <add>, %86, %cst_98 [1] : vector<4x256xf32> to vector<4xf32>
    %148 = vector.shape_cast %147 : vector<4xf32> to vector<4x1xf32>
    %cst_99 = arith.constant 2.560000e+02 : f32
    %149 = vector.broadcast %cst_99 : f32 to vector<4x1xf32>
    %150 = arith.divf %148, %149 : vector<4x1xf32>
    %cst_100 = arith.constant dense<0.000000e+00> : vector<4xf32>
    %151 = vector.multi_reduction <add>, %146, %cst_100 [1] : vector<4x256xf32> to vector<4xf32>
    %152 = vector.shape_cast %151 : vector<4xf32> to vector<4x1xf32>
    %cst_101 = arith.constant 2.560000e+02 : f32
    %153 = vector.broadcast %cst_101 : f32 to vector<4x1xf32>
    %154 = arith.divf %152, %153 : vector<4x1xf32>
    %155 = vector.broadcast %150 : vector<4x1xf32> to vector<4x256xf32>
    %156 = arith.subf %86, %155 : vector<4x256xf32>
    %157 = arith.mulf %156, %156 : vector<4x256xf32>
    %cst_102 = arith.constant dense<0.000000e+00> : vector<4xf32>
    %158 = vector.multi_reduction <add>, %157, %cst_102 [1] : vector<4x256xf32> to vector<4xf32>
    %159 = vector.shape_cast %158 : vector<4xf32> to vector<4x1xf32>
    %cst_103 = arith.constant 0.00392156886 : f32
    %160 = vector.broadcast %cst_103 : f32 to vector<4x1xf32>
    %161 = arith.mulf %159, %160 : vector<4x1xf32>
    %162 = vector.broadcast %154 : vector<4x1xf32> to vector<4x256xf32>
    %163 = arith.subf %146, %162 : vector<4x256xf32>
    %164 = arith.mulf %163, %163 : vector<4x256xf32>
    %cst_104 = arith.constant dense<0.000000e+00> : vector<4xf32>
    %165 = vector.multi_reduction <add>, %164, %cst_104 [1] : vector<4x256xf32> to vector<4xf32>
    %166 = vector.shape_cast %165 : vector<4xf32> to vector<4x1xf32>
    %cst_105 = arith.constant 0.00392156886 : f32
    %167 = vector.broadcast %cst_105 : f32 to vector<4x1xf32>
    %168 = arith.mulf %166, %167 : vector<4x1xf32>
    %cst_106 = arith.constant 9.99999974E-6 : f32
    %169 = vector.broadcast %cst_106 : f32 to vector<4x1xf32>
    %170 = arith.addf %161, %169 : vector<4x1xf32>
    %171 = math.rsqrt %170 : vector<4x1xf32>
    %cst_107 = arith.constant 9.99999974E-6 : f32
    %172 = vector.broadcast %cst_107 : f32 to vector<4x1xf32>
    %173 = arith.addf %168, %172 : vector<4x1xf32>
    %174 = math.sqrt %173 : vector<4x1xf32>
    %175 = arith.mulf %171, %174 : vector<4x1xf32>
    %176 = vector.broadcast %150 : vector<4x1xf32> to vector<4x256xf32>
    %177 = arith.subf %86, %176 : vector<4x256xf32>
    %178 = vector.broadcast %175 : vector<4x1xf32> to vector<4x256xf32>
    %179 = arith.mulf %177, %178 : vector<4x256xf32>
    %180 = vector.broadcast %154 : vector<4x1xf32> to vector<4x256xf32>
    %181 = arith.addf %179, %180 : vector<4x256xf32>
    %cst_108 = arith.constant 0.000000e+00 : f32
    %182 = vector.broadcast %cst_108 : f32 to vector<4x256xf32>
    %183 = arith.maximumf %181, %182 : vector<4x256xf32>
    %cst_109 = arith.constant 0.000000e+00 : f32
    %184 = vector.broadcast %cst_109 : f32 to vector<4x256xf32>
    %185 = arith.maximumf %146, %184 : vector<4x256xf32>
    %c0_110 = arith.constant 0 : index
    %c128_111 = arith.constant 128 : index
    %186 = vector.load %arg5[%c0_110, %c128_111] : memref<4x512xf32, #tpu.memory_space<vmem>>, vector<4x256xf32>
    tpu.vector_store %arg5[%c0_110, %c128_111], %183 {strides = array<i32>} : memref<4x512xf32, #tpu.memory_space<vmem>>, vector<4x256xf32>,
    %c0_112 = arith.constant 0 : index
    %c0_113 = arith.constant 0 : index
    %187 = vector.load %arg5[%c0_112, %c0_113] : memref<4x512xf32, #tpu.memory_space<vmem>>, vector<4x512xf32>
    %cst_114 = arith.constant 0.000000e+00 : f32
    %188 = vector.broadcast %cst_114 : f32 to vector<4x256xf32>
    %189 = vector.extract_strided_slice %187 {offsets = [0, 111], sizes = [4, 256], strides = [1, 1]} : vector<4x512xf32> to vector<4x256xf32>
    %cst_115 = arith.constant 0.000000e+00 : f32
    %190 = vector.broadcast %cst_115 : f32 to vector<4x256xf32>
    %191 = arith.select %18, %189, %190 : vector<4x256xi1>, vector<4x256xf32>
    %c0_116 = arith.constant 0 : index
    %c0_117 = arith.constant 0 : index
    %c0_118 = arith.constant 0 : index
    %192 = vector.load %arg2[%c0_116, %c0_117, %c0_118] : memref<9x4x4xf32, #tpu.memory_space<vmem>>, vector<1x4x4xf32>
    %193 = vector.shape_cast %192 : vector<1x4x4xf32> to vector<4x4xf32>
    %cst_119 = arith.constant dense<0.000000e+00> : vector<4x256xf32>
    %194 = tpu.matmul %193, %191, %cst_119 {dimension_numbers = #tpu.dot_dimension_numbers<[1], [0], [0], [1], [0, 0, 1, 1], [], []>} : vector<4x4xf32>, vector<4x256xf32>, vector<4x256xf32> -> vector<4x256xf32>
    %195 = arith.addf %188, %194 : vector<4x256xf32>
    %196 = vector.extract_strided_slice %187 {offsets = [0, 112], sizes = [4, 256], strides = [1, 1]} : vector<4x512xf32> to vector<4x256xf32>
    %c1_120 = arith.constant 1 : index
    %c0_121 = arith.constant 0 : index
    %c0_122 = arith.constant 0 : index
    %197 = vector.load %arg2[%c1_120, %c0_121, %c0_122] : memref<9x4x4xf32, #tpu.memory_space<vmem>>, vector<1x4x4xf32>
    %198 = vector.shape_cast %197 : vector<1x4x4xf32> to vector<4x4xf32>
    %cst_123 = arith.constant dense<0.000000e+00> : vector<4x256xf32>
    %199 = tpu.matmul %198, %196, %cst_123 {dimension_numbers = #tpu.dot_dimension_numbers<[1], [0], [0], [1], [0, 0, 1, 1], [], []>} : vector<4x4xf32>, vector<4x256xf32>, vector<4x256xf32> -> vector<4x256xf32>
    %200 = arith.addf %195, %199 : vector<4x256xf32>
    %201 = vector.extract_strided_slice %187 {offsets = [0, 113], sizes = [4, 256], strides = [1, 1]} : vector<4x512xf32> to vector<4x256xf32>
    %cst_124 = arith.constant 0.000000e+00 : f32
    %202 = vector.broadcast %cst_124 : f32 to vector<4x256xf32>
    %203 = arith.select %20, %201, %202 : vector<4x256xi1>, vector<4x256xf32>
    %c2_125 = arith.constant 2 : index
    %c0_126 = arith.constant 0 : index
    %c0_127 = arith.constant 0 : index
    %204 = vector.load %arg2[%c2_125, %c0_126, %c0_127] : memref<9x4x4xf32, #tpu.memory_space<vmem>>, vector<1x4x4xf32>
    %205 = vector.shape_cast %204 : vector<1x4x4xf32> to vector<4x4xf32>
    %cst_128 = arith.constant dense<0.000000e+00> : vector<4x256xf32>
    %206 = tpu.matmul %205, %203, %cst_128 {dimension_numbers = #tpu.dot_dimension_numbers<[1], [0], [0], [1], [0, 0, 1, 1], [], []>} : vector<4x4xf32>, vector<4x256xf32>, vector<4x256xf32> -> vector<4x256xf32>
    %207 = arith.addf %200, %206 : vector<4x256xf32>
    %208 = vector.extract_strided_slice %187 {offsets = [0, 127], sizes = [4, 256], strides = [1, 1]} : vector<4x512xf32> to vector<4x256xf32>
    %cst_129 = arith.constant 0.000000e+00 : f32
    %209 = vector.broadcast %cst_129 : f32 to vector<4x256xf32>
    %210 = arith.select %18, %208, %209 : vector<4x256xi1>, vector<4x256xf32>
    %c3_130 = arith.constant 3 : index
    %c0_131 = arith.constant 0 : index
    %c0_132 = arith.constant 0 : index
    %211 = vector.load %arg2[%c3_130, %c0_131, %c0_132] : memref<9x4x4xf32, #tpu.memory_space<vmem>>, vector<1x4x4xf32>
    %212 = vector.shape_cast %211 : vector<1x4x4xf32> to vector<4x4xf32>
    %cst_133 = arith.constant dense<0.000000e+00> : vector<4x256xf32>
    %213 = tpu.matmul %212, %210, %cst_133 {dimension_numbers = #tpu.dot_dimension_numbers<[1], [0], [0], [1], [0, 0, 1, 1], [], []>} : vector<4x4xf32>, vector<4x256xf32>, vector<4x256xf32> -> vector<4x256xf32>
    %214 = arith.addf %207, %213 : vector<4x256xf32>
    %215 = vector.extract_strided_slice %187 {offsets = [0, 128], sizes = [4, 256], strides = [1, 1]} : vector<4x512xf32> to vector<4x256xf32>
    %c4_134 = arith.constant 4 : index
    %c0_135 = arith.constant 0 : index
    %c0_136 = arith.constant 0 : index
    %216 = vector.load %arg2[%c4_134, %c0_135, %c0_136] : memref<9x4x4xf32, #tpu.memory_space<vmem>>, vector<1x4x4xf32>
    %217 = vector.shape_cast %216 : vector<1x4x4xf32> to vector<4x4xf32>
    %cst_137 = arith.constant dense<0.000000e+00> : vector<4x256xf32>
    %218 = tpu.matmul %217, %215, %cst_137 {dimension_numbers = #tpu.dot_dimension_numbers<[1], [0], [0], [1], [0, 0, 1, 1], [], []>} : vector<4x4xf32>, vector<4x256xf32>, vector<4x256xf32> -> vector<4x256xf32>
    %219 = arith.addf %214, %218 : vector<4x256xf32>
    %220 = vector.extract_strided_slice %187 {offsets = [0, 129], sizes = [4, 256], strides = [1, 1]} : vector<4x512xf32> to vector<4x256xf32>
    %cst_138 = arith.constant 0.000000e+00 : f32
    %221 = vector.broadcast %cst_138 : f32 to vector<4x256xf32>
    %222 = arith.select %20, %220, %221 : vector<4x256xi1>, vector<4x256xf32>
    %c5_139 = arith.constant 5 : index
    %c0_140 = arith.constant 0 : index
    %c0_141 = arith.constant 0 : index
    %223 = vector.load %arg2[%c5_139, %c0_140, %c0_141] : memref<9x4x4xf32, #tpu.memory_space<vmem>>, vector<1x4x4xf32>
    %224 = vector.shape_cast %223 : vector<1x4x4xf32> to vector<4x4xf32>
    %cst_142 = arith.constant dense<0.000000e+00> : vector<4x256xf32>
    %225 = tpu.matmul %224, %222, %cst_142 {dimension_numbers = #tpu.dot_dimension_numbers<[1], [0], [0], [1], [0, 0, 1, 1], [], []>} : vector<4x4xf32>, vector<4x256xf32>, vector<4x256xf32> -> vector<4x256xf32>
    %226 = arith.addf %219, %225 : vector<4x256xf32>
    %227 = vector.extract_strided_slice %187 {offsets = [0, 143], sizes = [4, 256], strides = [1, 1]} : vector<4x512xf32> to vector<4x256xf32>
    %cst_143 = arith.constant 0.000000e+00 : f32
    %228 = vector.broadcast %cst_143 : f32 to vector<4x256xf32>
    %229 = arith.select %18, %227, %228 : vector<4x256xi1>, vector<4x256xf32>
    %c6_144 = arith.constant 6 : index
    %c0_145 = arith.constant 0 : index
    %c0_146 = arith.constant 0 : index
    %230 = vector.load %arg2[%c6_144, %c0_145, %c0_146] : memref<9x4x4xf32, #tpu.memory_space<vmem>>, vector<1x4x4xf32>
    %231 = vector.shape_cast %230 : vector<1x4x4xf32> to vector<4x4xf32>
    %cst_147 = arith.constant dense<0.000000e+00> : vector<4x256xf32>
    %232 = tpu.matmul %231, %229, %cst_147 {dimension_numbers = #tpu.dot_dimension_numbers<[1], [0], [0], [1], [0, 0, 1, 1], [], []>} : vector<4x4xf32>, vector<4x256xf32>, vector<4x256xf32> -> vector<4x256xf32>
    %233 = arith.addf %226, %232 : vector<4x256xf32>
    %234 = vector.extract_strided_slice %187 {offsets = [0, 144], sizes = [4, 256], strides = [1, 1]} : vector<4x512xf32> to vector<4x256xf32>
    %c7_148 = arith.constant 7 : index
    %c0_149 = arith.constant 0 : index
    %c0_150 = arith.constant 0 : index
    %235 = vector.load %arg2[%c7_148, %c0_149, %c0_150] : memref<9x4x4xf32, #tpu.memory_space<vmem>>, vector<1x4x4xf32>
    %236 = vector.shape_cast %235 : vector<1x4x4xf32> to vector<4x4xf32>
    %cst_151 = arith.constant dense<0.000000e+00> : vector<4x256xf32>
    %237 = tpu.matmul %236, %234, %cst_151 {dimension_numbers = #tpu.dot_dimension_numbers<[1], [0], [0], [1], [0, 0, 1, 1], [], []>} : vector<4x4xf32>, vector<4x256xf32>, vector<4x256xf32> -> vector<4x256xf32>
    %238 = arith.addf %233, %237 : vector<4x256xf32>
    %239 = vector.extract_strided_slice %187 {offsets = [0, 145], sizes = [4, 256], strides = [1, 1]} : vector<4x512xf32> to vector<4x256xf32>
    %cst_152 = arith.constant 0.000000e+00 : f32
    %240 = vector.broadcast %cst_152 : f32 to vector<4x256xf32>
    %241 = arith.select %20, %239, %240 : vector<4x256xi1>, vector<4x256xf32>
    %c8_153 = arith.constant 8 : index
    %c0_154 = arith.constant 0 : index
    %c0_155 = arith.constant 0 : index
    %242 = vector.load %arg2[%c8_153, %c0_154, %c0_155] : memref<9x4x4xf32, #tpu.memory_space<vmem>>, vector<1x4x4xf32>
    %243 = vector.shape_cast %242 : vector<1x4x4xf32> to vector<4x4xf32>
    %cst_156 = arith.constant dense<0.000000e+00> : vector<4x256xf32>
    %244 = tpu.matmul %243, %241, %cst_156 {dimension_numbers = #tpu.dot_dimension_numbers<[1], [0], [0], [1], [0, 0, 1, 1], [], []>} : vector<4x4xf32>, vector<4x256xf32>, vector<4x256xf32> -> vector<4x256xf32>
    %245 = arith.addf %238, %244 : vector<4x256xf32>
    %c0_157 = arith.constant 0 : index
    %c128_158 = arith.constant 128 : index
    %246 = vector.load %arg5[%c0_157, %c128_158] : memref<4x512xf32, #tpu.memory_space<vmem>>, vector<4x256xf32>
    tpu.vector_store %arg5[%c0_157, %c128_158], %185 {strides = array<i32>} : memref<4x512xf32, #tpu.memory_space<vmem>>, vector<4x256xf32>,
    %c0_159 = arith.constant 0 : index
    %c0_160 = arith.constant 0 : index
    %247 = vector.load %arg5[%c0_159, %c0_160] : memref<4x512xf32, #tpu.memory_space<vmem>>, vector<4x512xf32>
    %cst_161 = arith.constant 0.000000e+00 : f32
    %248 = vector.broadcast %cst_161 : f32 to vector<4x256xf32>
    %249 = vector.extract_strided_slice %247 {offsets = [0, 111], sizes = [4, 256], strides = [1, 1]} : vector<4x512xf32> to vector<4x256xf32>
    %cst_162 = arith.constant 0.000000e+00 : f32
    %250 = vector.broadcast %cst_162 : f32 to vector<4x256xf32>
    %251 = arith.select %18, %249, %250 : vector<4x256xi1>, vector<4x256xf32>
    %c0_163 = arith.constant 0 : index
    %c0_164 = arith.constant 0 : index
    %c0_165 = arith.constant 0 : index
    %252 = vector.load %arg2[%c0_163, %c0_164, %c0_165] : memref<9x4x4xf32, #tpu.memory_space<vmem>>, vector<1x4x4xf32>
    %253 = vector.shape_cast %252 : vector<1x4x4xf32> to vector<4x4xf32>
    %cst_166 = arith.constant dense<0.000000e+00> : vector<4x256xf32>
    %254 = tpu.matmul %253, %251, %cst_166 {dimension_numbers = #tpu.dot_dimension_numbers<[1], [0], [0], [1], [0, 0, 1, 1], [], []>} : vector<4x4xf32>, vector<4x256xf32>, vector<4x256xf32> -> vector<4x256xf32>
    %255 = arith.addf %248, %254 : vector<4x256xf32>
    %256 = vector.extract_strided_slice %247 {offsets = [0, 112], sizes = [4, 256], strides = [1, 1]} : vector<4x512xf32> to vector<4x256xf32>
    %c1_167 = arith.constant 1 : index
    %c0_168 = arith.constant 0 : index
    %c0_169 = arith.constant 0 : index
    %257 = vector.load %arg2[%c1_167, %c0_168, %c0_169] : memref<9x4x4xf32, #tpu.memory_space<vmem>>, vector<1x4x4xf32>
    %258 = vector.shape_cast %257 : vector<1x4x4xf32> to vector<4x4xf32>
    %cst_170 = arith.constant dense<0.000000e+00> : vector<4x256xf32>
    %259 = tpu.matmul %258, %256, %cst_170 {dimension_numbers = #tpu.dot_dimension_numbers<[1], [0], [0], [1], [0, 0, 1, 1], [], []>} : vector<4x4xf32>, vector<4x256xf32>, vector<4x256xf32> -> vector<4x256xf32>
    %260 = arith.addf %255, %259 : vector<4x256xf32>
    %261 = vector.extract_strided_slice %247 {offsets = [0, 113], sizes = [4, 256], strides = [1, 1]} : vector<4x512xf32> to vector<4x256xf32>
    %cst_171 = arith.constant 0.000000e+00 : f32
    %262 = vector.broadcast %cst_171 : f32 to vector<4x256xf32>
    %263 = arith.select %20, %261, %262 : vector<4x256xi1>, vector<4x256xf32>
    %c2_172 = arith.constant 2 : index
    %c0_173 = arith.constant 0 : index
    %c0_174 = arith.constant 0 : index
    %264 = vector.load %arg2[%c2_172, %c0_173, %c0_174] : memref<9x4x4xf32, #tpu.memory_space<vmem>>, vector<1x4x4xf32>
    %265 = vector.shape_cast %264 : vector<1x4x4xf32> to vector<4x4xf32>
    %cst_175 = arith.constant dense<0.000000e+00> : vector<4x256xf32>
    %266 = tpu.matmul %265, %263, %cst_175 {dimension_numbers = #tpu.dot_dimension_numbers<[1], [0], [0], [1], [0, 0, 1, 1], [], []>} : vector<4x4xf32>, vector<4x256xf32>, vector<4x256xf32> -> vector<4x256xf32>
    %267 = arith.addf %260, %266 : vector<4x256xf32>
    %268 = vector.extract_strided_slice %247 {offsets = [0, 127], sizes = [4, 256], strides = [1, 1]} : vector<4x512xf32> to vector<4x256xf32>
    %cst_176 = arith.constant 0.000000e+00 : f32
    %269 = vector.broadcast %cst_176 : f32 to vector<4x256xf32>
    %270 = arith.select %18, %268, %269 : vector<4x256xi1>, vector<4x256xf32>
    %c3_177 = arith.constant 3 : index
    %c0_178 = arith.constant 0 : index
    %c0_179 = arith.constant 0 : index
    %271 = vector.load %arg2[%c3_177, %c0_178, %c0_179] : memref<9x4x4xf32, #tpu.memory_space<vmem>>, vector<1x4x4xf32>
    %272 = vector.shape_cast %271 : vector<1x4x4xf32> to vector<4x4xf32>
    %cst_180 = arith.constant dense<0.000000e+00> : vector<4x256xf32>
    %273 = tpu.matmul %272, %270, %cst_180 {dimension_numbers = #tpu.dot_dimension_numbers<[1], [0], [0], [1], [0, 0, 1, 1], [], []>} : vector<4x4xf32>, vector<4x256xf32>, vector<4x256xf32> -> vector<4x256xf32>
    %274 = arith.addf %267, %273 : vector<4x256xf32>
    %275 = vector.extract_strided_slice %247 {offsets = [0, 128], sizes = [4, 256], strides = [1, 1]} : vector<4x512xf32> to vector<4x256xf32>
    %c4_181 = arith.constant 4 : index
    %c0_182 = arith.constant 0 : index
    %c0_183 = arith.constant 0 : index
    %276 = vector.load %arg2[%c4_181, %c0_182, %c0_183] : memref<9x4x4xf32, #tpu.memory_space<vmem>>, vector<1x4x4xf32>
    %277 = vector.shape_cast %276 : vector<1x4x4xf32> to vector<4x4xf32>
    %cst_184 = arith.constant dense<0.000000e+00> : vector<4x256xf32>
    %278 = tpu.matmul %277, %275, %cst_184 {dimension_numbers = #tpu.dot_dimension_numbers<[1], [0], [0], [1], [0, 0, 1, 1], [], []>} : vector<4x4xf32>, vector<4x256xf32>, vector<4x256xf32> -> vector<4x256xf32>
    %279 = arith.addf %274, %278 : vector<4x256xf32>
    %280 = vector.extract_strided_slice %247 {offsets = [0, 129], sizes = [4, 256], strides = [1, 1]} : vector<4x512xf32> to vector<4x256xf32>
    %cst_185 = arith.constant 0.000000e+00 : f32
    %281 = vector.broadcast %cst_185 : f32 to vector<4x256xf32>
    %282 = arith.select %20, %280, %281 : vector<4x256xi1>, vector<4x256xf32>
    %c5_186 = arith.constant 5 : index
    %c0_187 = arith.constant 0 : index
    %c0_188 = arith.constant 0 : index
    %283 = vector.load %arg2[%c5_186, %c0_187, %c0_188] : memref<9x4x4xf32, #tpu.memory_space<vmem>>, vector<1x4x4xf32>
    %284 = vector.shape_cast %283 : vector<1x4x4xf32> to vector<4x4xf32>
    %cst_189 = arith.constant dense<0.000000e+00> : vector<4x256xf32>
    %285 = tpu.matmul %284, %282, %cst_189 {dimension_numbers = #tpu.dot_dimension_numbers<[1], [0], [0], [1], [0, 0, 1, 1], [], []>} : vector<4x4xf32>, vector<4x256xf32>, vector<4x256xf32> -> vector<4x256xf32>
    %286 = arith.addf %279, %285 : vector<4x256xf32>
    %287 = vector.extract_strided_slice %247 {offsets = [0, 143], sizes = [4, 256], strides = [1, 1]} : vector<4x512xf32> to vector<4x256xf32>
    %cst_190 = arith.constant 0.000000e+00 : f32
    %288 = vector.broadcast %cst_190 : f32 to vector<4x256xf32>
    %289 = arith.select %18, %287, %288 : vector<4x256xi1>, vector<4x256xf32>
    %c6_191 = arith.constant 6 : index
    %c0_192 = arith.constant 0 : index
    %c0_193 = arith.constant 0 : index
    %290 = vector.load %arg2[%c6_191, %c0_192, %c0_193] : memref<9x4x4xf32, #tpu.memory_space<vmem>>, vector<1x4x4xf32>
    %291 = vector.shape_cast %290 : vector<1x4x4xf32> to vector<4x4xf32>
    %cst_194 = arith.constant dense<0.000000e+00> : vector<4x256xf32>
    %292 = tpu.matmul %291, %289, %cst_194 {dimension_numbers = #tpu.dot_dimension_numbers<[1], [0], [0], [1], [0, 0, 1, 1], [], []>} : vector<4x4xf32>, vector<4x256xf32>, vector<4x256xf32> -> vector<4x256xf32>
    %293 = arith.addf %286, %292 : vector<4x256xf32>
    %294 = vector.extract_strided_slice %247 {offsets = [0, 144], sizes = [4, 256], strides = [1, 1]} : vector<4x512xf32> to vector<4x256xf32>
    %c7_195 = arith.constant 7 : index
    %c0_196 = arith.constant 0 : index
    %c0_197 = arith.constant 0 : index
    %295 = vector.load %arg2[%c7_195, %c0_196, %c0_197] : memref<9x4x4xf32, #tpu.memory_space<vmem>>, vector<1x4x4xf32>
    %296 = vector.shape_cast %295 : vector<1x4x4xf32> to vector<4x4xf32>
    %cst_198 = arith.constant dense<0.000000e+00> : vector<4x256xf32>
    %297 = tpu.matmul %296, %294, %cst_198 {dimension_numbers = #tpu.dot_dimension_numbers<[1], [0], [0], [1], [0, 0, 1, 1], [], []>} : vector<4x4xf32>, vector<4x256xf32>, vector<4x256xf32> -> vector<4x256xf32>
    %298 = arith.addf %293, %297 : vector<4x256xf32>
    %299 = vector.extract_strided_slice %247 {offsets = [0, 145], sizes = [4, 256], strides = [1, 1]} : vector<4x512xf32> to vector<4x256xf32>
    %cst_199 = arith.constant 0.000000e+00 : f32
    %300 = vector.broadcast %cst_199 : f32 to vector<4x256xf32>
    %301 = arith.select %20, %299, %300 : vector<4x256xi1>, vector<4x256xf32>
    %c8_200 = arith.constant 8 : index
    %c0_201 = arith.constant 0 : index
    %c0_202 = arith.constant 0 : index
    %302 = vector.load %arg2[%c8_200, %c0_201, %c0_202] : memref<9x4x4xf32, #tpu.memory_space<vmem>>, vector<1x4x4xf32>
    %303 = vector.shape_cast %302 : vector<1x4x4xf32> to vector<4x4xf32>
    %cst_203 = arith.constant dense<0.000000e+00> : vector<4x256xf32>
    %304 = tpu.matmul %303, %301, %cst_203 {dimension_numbers = #tpu.dot_dimension_numbers<[1], [0], [0], [1], [0, 0, 1, 1], [], []>} : vector<4x4xf32>, vector<4x256xf32>, vector<4x256xf32> -> vector<4x256xf32>
    %305 = arith.addf %298, %304 : vector<4x256xf32>
    %cst_204 = arith.constant dense<0.000000e+00> : vector<4xf32>
    %306 = vector.multi_reduction <add>, %245, %cst_204 [1] : vector<4x256xf32> to vector<4xf32>
    %307 = vector.shape_cast %306 : vector<4xf32> to vector<4x1xf32>
    %cst_205 = arith.constant 2.560000e+02 : f32
    %308 = vector.broadcast %cst_205 : f32 to vector<4x1xf32>
    %309 = arith.divf %307, %308 : vector<4x1xf32>
    %cst_206 = arith.constant dense<0.000000e+00> : vector<4xf32>
    %310 = vector.multi_reduction <add>, %305, %cst_206 [1] : vector<4x256xf32> to vector<4xf32>
    %311 = vector.shape_cast %310 : vector<4xf32> to vector<4x1xf32>
    %cst_207 = arith.constant 2.560000e+02 : f32
    %312 = vector.broadcast %cst_207 : f32 to vector<4x1xf32>
    %313 = arith.divf %311, %312 : vector<4x1xf32>
    %314 = vector.broadcast %309 : vector<4x1xf32> to vector<4x256xf32>
    %315 = arith.subf %245, %314 : vector<4x256xf32>
    %316 = arith.mulf %315, %315 : vector<4x256xf32>
    %cst_208 = arith.constant dense<0.000000e+00> : vector<4xf32>
    %317 = vector.multi_reduction <add>, %316, %cst_208 [1] : vector<4x256xf32> to vector<4xf32>
    %318 = vector.shape_cast %317 : vector<4xf32> to vector<4x1xf32>
    %cst_209 = arith.constant 0.00392156886 : f32
    %319 = vector.broadcast %cst_209 : f32 to vector<4x1xf32>
    %320 = arith.mulf %318, %319 : vector<4x1xf32>
    %321 = vector.broadcast %313 : vector<4x1xf32> to vector<4x256xf32>
    %322 = arith.subf %305, %321 : vector<4x256xf32>
    %323 = arith.mulf %322, %322 : vector<4x256xf32>
    %cst_210 = arith.constant dense<0.000000e+00> : vector<4xf32>
    %324 = vector.multi_reduction <add>, %323, %cst_210 [1] : vector<4x256xf32> to vector<4xf32>
    %325 = vector.shape_cast %324 : vector<4xf32> to vector<4x1xf32>
    %cst_211 = arith.constant 0.00392156886 : f32
    %326 = vector.broadcast %cst_211 : f32 to vector<4x1xf32>
    %327 = arith.mulf %325, %326 : vector<4x1xf32>
    %cst_212 = arith.constant 9.99999974E-6 : f32
    %328 = vector.broadcast %cst_212 : f32 to vector<4x1xf32>
    %329 = arith.addf %320, %328 : vector<4x1xf32>
    %330 = math.rsqrt %329 : vector<4x1xf32>
    %cst_213 = arith.constant 9.99999974E-6 : f32
    %331 = vector.broadcast %cst_213 : f32 to vector<4x1xf32>
    %332 = arith.addf %327, %331 : vector<4x1xf32>
    %333 = math.sqrt %332 : vector<4x1xf32>
    %334 = arith.mulf %330, %333 : vector<4x1xf32>
    %335 = vector.broadcast %309 : vector<4x1xf32> to vector<4x256xf32>
    %336 = arith.subf %245, %335 : vector<4x256xf32>
    %337 = vector.broadcast %334 : vector<4x1xf32> to vector<4x256xf32>
    %338 = arith.mulf %336, %337 : vector<4x256xf32>
    %339 = vector.broadcast %313 : vector<4x1xf32> to vector<4x256xf32>
    %340 = arith.addf %338, %339 : vector<4x256xf32>
    %341 = arith.addf %340, %24 : vector<4x256xf32>
    %cst_214 = arith.constant 0.000000e+00 : f32
    %342 = vector.broadcast %cst_214 : f32 to vector<4x256xf32>
    %343 = arith.maximumf %341, %342 : vector<4x256xf32>
    %c0_215 = arith.constant 0 : index
    %c0_216 = arith.constant 0 : index
    %c0_217 = arith.constant 0 : index
    %c0_218 = arith.constant 0 : index
    %344 = vector.load %arg4[%c0_215, %c0_216, %c0_217, %c0_218] : memref<2x1x4x256xf32, #tpu.memory_space<vmem>>, vector<1x1x4x256xf32>
    %345 = vector.shape_cast %344 : vector<1x1x4x256xf32> to vector<4x256xf32>
    %346 = vector.shape_cast %343 : vector<4x256xf32> to vector<1x1x4x256xf32>
    tpu.vector_store %arg4[%c0_215, %c0_216, %c0_217, %c0_218], %346 {strides = array<i32>} : memref<2x1x4x256xf32, #tpu.memory_space<vmem>>, vector<1x1x4x256xf32>,
    %347 = arith.addf %305, %26 : vector<4x256xf32>
    %cst_219 = arith.constant 0.000000e+00 : f32
    %348 = vector.broadcast %cst_219 : f32 to vector<4x256xf32>
    %349 = arith.maximumf %347, %348 : vector<4x256xf32>
    %c1_220 = arith.constant 1 : index
    %c0_221 = arith.constant 0 : index
    %c0_222 = arith.constant 0 : index
    %c0_223 = arith.constant 0 : index
    %350 = vector.load %arg4[%c1_220, %c0_221, %c0_222, %c0_223] : memref<2x1x4x256xf32, #tpu.memory_space<vmem>>, vector<1x1x4x256xf32>
    %351 = vector.shape_cast %350 : vector<1x1x4x256xf32> to vector<4x256xf32>
    %352 = vector.shape_cast %349 : vector<4x256xf32> to vector<1x1x4x256xf32>
    tpu.vector_store %arg4[%c1_220, %c0_221, %c0_222, %c0_223], %352 {strides = array<i32>} : memref<2x1x4x256xf32, #tpu.memory_space<vmem>>, vector<1x1x4x256xf32>,
    return
  }
  func.func @transform_0(%arg0: i32) -> (i32, i32, i32) {
    %c0_i32 = arith.constant 0 : i32
    %c0_i32_0 = arith.constant 0 : i32
    %c0_i32_1 = arith.constant 0 : i32
    %c0_i32_2 = arith.constant 0 : i32
    return %c0_i32, %c0_i32_0, %c0_i32_1 : i32, i32, i32
  }
  func.func @transform_1(%arg0: i32) -> (i32, i32, i32) {
    %c0_i32 = arith.constant 0 : i32
    %c0_i32_0 = arith.constant 0 : i32
    %c0_i32_1 = arith.constant 0 : i32
    %c0_i32_2 = arith.constant 0 : i32
    return %c0_i32, %c0_i32_0, %c0_i32_1 : i32, i32, i32
  }
  func.func @transform_2(%arg0: i32) -> (i32, i32, i32, i32) {
    %c0_i32 = arith.constant 0 : i32
    %c0_i32_0 = arith.constant 0 : i32
    %c0_i32_1 = arith.constant 0 : i32
    %c0_i32_2 = arith.constant 0 : i32
    return %c0_i32, %arg0, %c0_i32_0, %c0_i32_1 : i32, i32, i32, i32
  }
  func.func @transform_3(%arg0: i32) -> (i32, i32, i32, i32) {
    %c0_i32 = arith.constant 0 : i32
    %c0_i32_0 = arith.constant 0 : i32
    %c0_i32_1 = arith.constant 0 : i32
    %c0_i32_2 = arith.constant 0 : i32
    return %c0_i32, %arg0, %c0_i32_0, %c0_i32_1 : i32, i32, i32, i32
  }
}

</mosaic_0001>

<bundles_post_ra>
// kernel: adaptive_block_forward.1
= control target key start
LH: loop header
LB: loop body
LE: loop exit
PB: predicated region body
PF: predicated region fallthrough
CT: control target
= control target key end

     0   :  { %v3771_v0 = vmov 0.0   ;;  %s3772_s16 = smov 16   ;;  %s3773_s17 = smov 17   ;;  %v14_v11 = vlaneseq  ;;  %vm78_vm0 = vcmask 130048   ;;  %vm85_vm1 = vcmask 1043456   ;;  %s4462_s2 = inlined_call_operand.vmem [shape: f32[2,1,4,256], index: 2, kind: input, shape index: {}]   ;;  %s4463_s0 = inlined_call_operand.vmem [shape: f32[9,4,4], index: 0, kind: input, shape index: {}]   ;;  %s4464_s1 = inlined_call_operand.vmem [shape: f32[9,4,4], index: 1, kind: input, shape index: {}]   ;;  %s4465_s3 = inlined_call_operand.vmem [shape: f32[2,1,4,256], index: 3, kind: output, shape index: {}]  }
   0x1   :  { %45 = vst [vmem:[#allocation2] sm:$0xff] %v3771_v0  ;;  %46 = vst [vmem:[#allocation2 + $0x8] sm:$0xff] %v3771_v0  ;;  %v3805_v1 = vld [vmem:[%s4462_s2] sm:$0xff]  ;;  %154 = vmatprep.mubr.f32.mxu0 %v3771_v0  ;;  %999 = vmatprep.mubr.f32.mxu1 %v3771_v0  ;;  %v3813_v2 = vld [vmem:[%s4462_s2 + $0x8] sm:$0xff]  ;;  %s3774_s2 = smov 15   ;;  %s3775_s18 = smov 1  }
   0x2   :  { %50 = vst [vmem:[#allocation2 + $0x4] sm:$0xff] %v3805_v1  ;;  %s3776_s19 = smov 127   ;;  %s3777_s20 = smov 113   ;;  %v15_v12 = vand.u32 127, %v14_v11  ;;  %v3541_v21 = vld [vmem:[%s4463_s0 + $0x4] sm:$0xf]  ;;  %v3524_v45 = vcombine.high %v3813_v2, %v3813_v2 }
   0x3   :  { %s3778_s21 = smov 112   ;;  %s3779_s22 = smov 111   ;;  %vm81_vm2 = vcmask 31744   ;;  %vm62_vm3 = vcmask 138240   ;;  %v3576_v34 = vld [vmem:[%s4463_s0 + $0x4] sm:$0xf] }
   0x4   :  { %v16_v13 = vadd.s32 128, %v15_v12  ;;  %v21_v29 = vand.u32 15, %v15_v12  ;;  %v69_v41 = vld [vmem:[%s4463_s0] sm:$0xf]  ;;  %vm247_vm6 = vcmask 121856   ;;  %vm344_vm9 = vcmask 7168  }
   0x5   :  { %v918_v49 = vld [vmem:[%s4463_s0] sm:$0xf]  ;;  %v3583_v60 = vld [vmem:[%s4463_s0 + $0x8] sm:$0xf]  ;;  %vm524_vm10 = vcmask 1039360   ;;  %vm621_vm11 = vcmask 924672  }
   0x6   :  { %v28_v16 = vand.u32 15, %v16_v13  ;;  %vm3932_vm5 = vcmp.ne.s32.totalorder %v21_v29, 0  ;;  %vm3966_vm8 = vcmp.ne.s32.totalorder %v21_v29, 15  ;;  %v3548_v63 = vld [vmem:[%s4463_s0 + $0x8] sm:$0xf]  ;;  %vm720_vm12 = vcmask 916480  }
   0x7   :  { %vm809_vm13 = vcmask 908288  }
   0x8   :  { %vm3915_vm4 = vcmp.ne.s32.totalorder %v28_v16, 0  ;;  %vm3952_vm7 = vcmp.ne.s32.totalorder %v28_v16, 15 }
   0x9   :  { %v3815_v3 = vld [vmem:[#allocation2 + $0x8] sm:$0xff]  ;;  %v51_v4 = vld [vmem:[#allocation2] sm:$0xff] }
   0xa   :  { %76 = vrot.lane.b32.xlu0 %v3815_v3, %s3772_s16  ;;  %72 = vrot.lane.b32.xlu1 %v51_v4, %s3772_s16  ;;  %v3820_v5 = vcombine.high %v51_v4, %v51_v4  ;;  %900 = vst [vmem:[#allocation2 + $0x4] sm:$0xff] %v3813_v2  ;;  %v517_v10 = vcombine.high %v3815_v3, %v3815_v3 }
   0xe   :  { %60 = vrot.lane.b32.xlu0 %v3815_v3, %s3773_s17  ;;  %74 = vrot.lane.b32.xlu1 %v3820_v5, %s3772_s16 }
  0x11   :  { %v3827_v6 = vld [vmem:[#allocation2 + $0x8] sm:$0xff]  ;;  %v901_v7 = vld [vmem:[#allocation2] sm:$0xff] }
  0x12   :  { %924 = vrot.lane.b32.xlu0 %v3827_v6, %s3772_s16  ;;  %58 = vrot.lane.b32.xlu1 %v3820_v5, %s3773_s17  ;;  %v3834_v8 = vcombine.high %v901_v7, %v901_v7  ;;  %v1357_v9 = vcombine.high %v3827_v6, %v3827_v6 }
  0x16   :  { %906 = vrot.lane.b32.xlu0 %v901_v7, %s3773_s17  ;;  %920 = vrot.lane.b32.xlu1 %v901_v7, %s3772_s16 }
  0x1a   :  { %922 = vrot.lane.b32.xlu0 %v3834_v8, %s3772_s16  ;;  %910 = vrot.lane.b32.xlu1 %v3827_v6, %s3773_s17 }
  0x1e   :  { %908 = vrot.lane.b32.xlu0 %v3834_v8, %s3773_s17  ;;  %56 = vrot.lane.b32.xlu1 %v51_v4, %s3773_s17 }
  0x22   :  { %1088 = vrot.lane.b32.xlu0 %v3834_v8, %s3774_s2  ;;  %1090 = vrot.lane.b32.xlu1 %v3827_v6, %s3774_s2 }
  0x26   :  { %1086 = vrot.lane.b32.xlu0 %v901_v7, %s3774_s2  ;;  %243 = vrot.lane.b32.xlu1 %v3820_v5, %s3774_s2 }
  0x2a   :  { %245 = vrot.lane.b32.xlu0 %v3815_v3, %s3774_s2  ;;  %241 = vrot.lane.b32.xlu1 %v51_v4, %s3774_s2 }
  0x2e   :  { %1183 = vrot.lane.b32.xlu0 %v3834_v8, %s3775_s18  ;;  %1185 = vrot.lane.b32.xlu1 %v3827_v6, %s3775_s18 }
  0x32   :  { %1181 = vrot.lane.b32.xlu0 %v901_v7, %s3775_s18  ;;  %340 = vrot.lane.b32.xlu1 %v3820_v5, %s3775_s18 }
  0x36   :  { %342 = vrot.lane.b32.xlu0 %v3815_v3, %s3775_s18  ;;  %338 = vrot.lane.b32.xlu1 %v51_v4, %s3775_s18 }
  0x3a   :  { %1360 = vrot.lane.b32.xlu0 %v3827_v6, %s3776_s19  ;;  %1362 = vrot.lane.b32.xlu1 %v1357_v9, %s3776_s19 }
  0x3e   :  { %1358 = vrot.lane.b32.xlu0 %v3834_v8, %s3776_s19  ;;  %520 = vrot.lane.b32.xlu1 %v3815_v3, %s3776_s19 }
  0x42   :  { %522 = vrot.lane.b32.xlu0 %v517_v10, %s3776_s19  ;;  %518 = vrot.lane.b32.xlu1 %v3820_v5, %s3776_s19 }
  0x46   :  { %1455 = vrot.lane.b32.xlu0 %v3827_v6, %s3777_s20  ;;  %1457 = vrot.lane.b32.xlu1 %v1357_v9, %s3777_s20 }
  0x4a   :  { %1453 = vrot.lane.b32.xlu0 %v3834_v8, %s3777_s20  ;;  %617 = vrot.lane.b32.xlu1 %v3815_v3, %s3777_s20 }
  0x4e   :  { %619 = vrot.lane.b32.xlu0 %v517_v10, %s3777_s20  ;;  %615 = vrot.lane.b32.xlu1 %v3820_v5, %s3777_s20 }
  0x52   :  { %1551 = vrot.lane.b32.xlu0 %v3827_v6, %s3778_s21  ;;  %1553 = vrot.lane.b32.xlu1 %v1357_v9, %s3778_s21 }
  0x56   :  { %1549 = vrot.lane.b32.xlu0 %v3834_v8, %s3778_s21  ;;  %716 = vrot.lane.b32.xlu1 %v3815_v3, %s3778_s21 }
  0x5a   :  { %718 = vrot.lane.b32.xlu0 %v517_v10, %s3778_s21  ;;  %714 = vrot.lane.b32.xlu1 %v3820_v5, %s3778_s21 }
  0x5e   :  { %1639 = vrot.lane.b32.xlu0 %v3827_v6, %s3779_s22  ;;  %1641 = vrot.lane.b32.xlu1 %v1357_v9, %s3779_s22 }
  0x62   :  { %1637 = vrot.lane.b32.xlu0 %v3834_v8, %s3779_s22  ;;  %805 = vrot.lane.b32.xlu1 %v3815_v3, %s3779_s22 }
  0x66   :  { %807 = vrot.lane.b32.xlu0 %v517_v10, %s3779_s22  ;;  %803 = vrot.lane.b32.xlu1 %v3820_v5, %s3779_s22 }
  0x7c   :  { %v77_v14 = vpop.permute.xlu0 %76  ;;  %v73_v15 = vpop.permute.xlu1 %72 }
  0x80   :  { %v61_v17 = vpop.permute.xlu0 %60  ;;  %v75_v18 = vpop.permute.xlu1 %74 }
  0x81   :  { %v80_v19 = vsel %vm78_vm0, %v75_v18, %v77_v14  ;;  %v79_v20 = vsel %vm78_vm0, %v73_v15, %v75_v18  ;;  %v3587_v14 = vld [vmem:[%s4463_s0 + $0xc] sm:$0xf] }
  0x82   :  { %3542 = vmatprep.subr.msk.mxu0 %vm85_vm1, %v80_v19 }
  0x83   :  { %3543 = vmatpush1.msk.msra.mxu0 %vm85_vm1, %v79_v20 }
  0x84   :  { %v925_v23 = vpop.permute.xlu0 %924  ;;  %v59_v24 = vpop.permute.xlu1 %58  ;;  %3544 = vmatmul.mubr.msk.f32.vlgmr.msra.gmra.mrb[0].mxu0 %vm81_vm2, %v3541_v21 }
  0x85   :  { %v64_v25 = vsel %vm62_vm3, %v59_v24, %v61_v17  ;;  %234 = vmatprep.mubr.f32.mxu0 %v3771_v0 }
  0x86   :  { %v68_v26 = vsel %vm3915_vm4, %v64_v25, 0.0  ;;  %v3591_v25 = vld [vmem:[%s4463_s0 + $0x10] sm:$0xf] }
  0x87   :  { %3545 = vmatprep.subr.msk.mxu0 %vm85_vm1, %v68_v26 }
  0x88   :  { %v907_v27 = vpop.permute.xlu0 %906  ;;  %v921_v28 = vpop.permute.xlu1 %920 }
  0x8c   :  { %v923_v30 = vpop.permute.xlu0 %922  ;;  %v911_v31 = vpop.permute.xlu1 %910 }
  0x8d   :  { %v927_v32 = vsel %vm78_vm0, %v923_v30, %v925_v23  ;;  %v926_v33 = vsel %vm78_vm0, %v921_v28, %v923_v30  ;;  %v3556_v30 = vld [vmem:[%s4463_s0 + $0x10] sm:$0xf] }
  0x8e   :  { %3577 = vmatprep.subr.msk.mxu1 %vm85_vm1, %v927_v32 }
  0x8f   :  { %3578 = vmatpush1.msk.msra.mxu1 %vm85_vm1, %v926_v33 }
  0x90   :  { %v909_v36 = vpop.permute.xlu0 %908  ;;  %v57_v37 = vpop.permute.xlu1 %56  ;;  %3579 = vmatmul.mubr.msk.f32.vlgmr.msra.gmra.mrb[0].mxu1 %vm81_vm2, %v3576_v34  ;;  %v3595_v34 = vld [vmem:[%s4463_s0 + $0x14] sm:$0xf] }
  0x91   :  { %v912_v38 = vsel %vm62_vm3, %v907_v27, %v909_v36  ;;  %v913_v39 = vsel %vm62_vm3, %v909_v36, %v911_v31  ;;  %v63_v40 = vsel %vm62_vm3, %v57_v37, %v59_v24  ;;  %1079 = vmatprep.mubr.f32.mxu1 %v3771_v0 }
  0x92   :  { %v916_v42 = vsel %vm3932_vm5, %v912_v38, 0.0  ;;  %v917_v43 = vsel %vm3915_vm4, %v913_v39, 0.0  ;;  %v67_v44 = vsel %vm3932_vm5, %v63_v40, 0.0 }
  0x93   :  { %3546 = vmatpush1.msk.msra.mxu0 %vm85_vm1, %v67_v44  ;;  %3580 = vmatprep.subr.msk.mxu1 %vm85_vm1, %v917_v43 }
  0x94   :  { %v1089_v46 = vpop.permute.xlu0 %1088  ;;  %v1091_v47 = vpop.permute.xlu1 %1090  ;;  %3581 = vmatpush1.msk.msra.mxu1 %vm85_vm1, %v916_v42  ;;  %3547 = vmatmul.mubr.msk.f32.vlgmr.msra.gmra.mrb[0].mxu0 %vm81_vm2, %v69_v41  ;;  %v3560_v42 = vld [vmem:[%s4463_s0 + $0x14] sm:$0xf] }
  0x95   :  { %v1093_v48 = vsel %vm247_vm6, %v1089_v46, %v1091_v47  ;;  %329 = vmatprep.mubr.f32.mxu0 %v3771_v0  ;;  %v3599_v47 = vld [vmem:[%s4463_s0 + $0x18] sm:$0xf] }
  0x96   :  { %v1097_v50 = vsel %vm3952_vm7, %v1093_v48, 0.0 }
  0x97   :  { %3584 = vmatprep.subr.msk.mxu1 %vm85_vm1, %v1097_v50 }
  0x98   :  { %v1087_v52 = vpop.permute.xlu0 %1086  ;;  %v244_v53 = vpop.permute.xlu1 %243  ;;  %3582 = vmatmul.mubr.msk.f32.vlgmr.msra.gmra.mrb[0].mxu1 %vm81_vm2, %v918_v49 }
  0x99   :  { %v1092_v54 = vsel %vm247_vm6, %v1087_v52, %v1089_v46  ;;  %1172 = vmatprep.mubr.f32.mxu1 %v3771_v0 }
  0x9a   :  { %v1096_v55 = vsel %vm3966_vm8, %v1092_v54, 0.0 }
  0x9b   :  { %3585 = vmatpush1.msk.msra.mxu1 %vm85_vm1, %v1096_v55 }
  0x9c   :  { %v246_v56 = vpop.permute.xlu0 %245  ;;  %v242_v57 = vpop.permute.xlu1 %241 }
  0x9d   :  { %v249_v58 = vsel %vm247_vm6, %v244_v53, %v246_v56  ;;  %v248_v59 = vsel %vm247_vm6, %v242_v57, %v244_v53  ;;  %v3564_v56 = vld [vmem:[%s4463_s0 + $0x18] sm:$0xf] }
  0x9e   :  { %v253_v61 = vsel %vm3952_vm7, %v249_v58, 0.0  ;;  %v252_v62 = vsel %vm3966_vm8, %v248_v59, 0.0 }
  0x9f   :  { %3549 = vmatprep.subr.msk.mxu0 %vm85_vm1, %v253_v61 }
  0xa0   :  { %v1184_v4 = vpop.permute.xlu0 %1183  ;;  %v1186_v7 = vpop.permute.xlu1 %1185  ;;  %3550 = vmatpush1.msk.msra.mxu0 %vm85_vm1, %v252_v62  ;;  %3586 = vmatmul.mubr.msk.f32.vlgmr.msra.gmra.mrb[0].mxu1 %vm81_vm2, %v3583_v60  ;;  %v3603_v62 = vld [vmem:[%s4463_s0 + $0x1c] sm:$0xf] }
  0xa1   :  { %v1188_v9 = vsel %vm344_vm9, %v1184_v4, %v1186_v7  ;;  %3551 = vmatmul.mubr.msk.f32.vlgmr.msra.gmra.mrb[0].mxu0 %vm81_vm2, %v3548_v63  ;;  %1267 = vmatprep.mubr.f32.mxu1 %v3771_v0 }
  0xa2   :  { %v1192_v10 = vsel %vm3915_vm4, %v1188_v9, 0.0  ;;  %426 = vmatprep.mubr.f32.mxu0 %v3771_v0 }
  0xa3   :  { %3588 = vmatprep.subr.msk.mxu1 %vm85_vm1, %v1192_v10 }
  0xa4   :  { %v1182_v11 = vpop.permute.xlu0 %1181  ;;  %v341_v12 = vpop.permute.xlu1 %340 }
  0xa5   :  { %v1187_v13 = vsel %vm344_vm9, %v1182_v11, %v1184_v4  ;;  %v3568_v11 = vld [vmem:[%s4463_s0 + $0x1c] sm:$0xf] }
  0xa6   :  { %v1191_v15 = vsel %vm3932_vm5, %v1187_v13, 0.0 }
  0xa7   :  { %3589 = vmatpush1.msk.msra.mxu1 %vm85_vm1, %v1191_v15 }
  0xa8   :  { %v343_v16 = vpop.permute.xlu0 %342  ;;  %v339_v17 = vpop.permute.xlu1 %338  ;;  %3590 = vmatmul.mubr.msk.f32.vlgmr.msra.gmra.mrb[0].mxu1 %vm81_vm2, %v3587_v14  ;;  %3592 = vmatprep.subr.msk.mxu1 %vm85_vm1, %v3827_v6  ;;  %v3552_v6 = vld [vmem:[%s4463_s0 + $0xc] sm:$0xf] }
  0xa9   :  { %v346_v18 = vsel %vm344_vm9, %v341_v12, %v343_v16  ;;  %v345_v19 = vsel %vm344_vm9, %v339_v17, %v341_v12  ;;  %3593 = vmatpush1.msk.msra.mxu1 %vm85_vm1, %v3834_v8  ;;  %1348 = vmatprep.mubr.f32.mxu1 %v3771_v0 }
  0xaa   :  { %v350_v20 = vsel %vm3915_vm4, %v346_v18, 0.0  ;;  %v349_v21 = vsel %vm3932_vm5, %v345_v19, 0.0  ;;  %v3607_v19 = vld [vmem:[%s4463_s0 + $0x20] sm:$0xf] }
  0xab   :  { %3553 = vmatprep.subr.msk.mxu0 %vm85_vm1, %v350_v20 }
  0xac   :  { %v1361_v23 = vpop.permute.xlu0 %1360  ;;  %v1363_v24 = vpop.permute.xlu1 %1362  ;;  %3554 = vmatpush1.msk.msra.mxu0 %vm85_vm1, %v349_v21 }
  0xad   :  { %v1365_v8 = vsel %vm524_vm10, %v1361_v23, %v1363_v24  ;;  %3555 = vmatmul.mubr.msk.f32.vlgmr.msra.gmra.mrb[0].mxu0 %vm81_vm2, %v3552_v6  ;;  %3557 = vmatprep.subr.msk.mxu0 %vm85_vm1, %v3815_v3 }
  0xae   :  { %v1369_v26 = vsel %vm3952_vm7, %v1365_v8, 0.0  ;;  %3558 = vmatpush1.msk.msra.mxu0 %vm85_vm1, %v3820_v5  ;;  %508 = vmatprep.mubr.f32.mxu0 %v3771_v0 }
  0xaf   :  { %3596 = vmatprep.subr.msk.mxu1 %vm85_vm1, %v1369_v26  ;;  %v3572_v26 = vld [vmem:[%s4463_s0 + $0x20] sm:$0xf] }
  0xb0   :  { %v1359_v27 = vpop.permute.xlu0 %1358  ;;  %v521_v28 = vpop.permute.xlu1 %520  ;;  %3594 = vmatmul.mubr.msk.f32.vlgmr.msra.gmra.mrb[0].mxu1 %vm81_vm2, %v3591_v25 }
  0xb1   :  { %v1364_v29 = vsel %vm524_vm10, %v1359_v27, %v1361_v23  ;;  %1444 = vmatprep.mubr.f32.mxu1 %v3771_v0 }
  0xb2   :  { %v1368_v3 = vsel %vm3966_vm8, %v1364_v29, 0.0 }
  0xb3   :  { %3597 = vmatpush1.msk.msra.mxu1 %vm85_vm1, %v1368_v3 }
  0xb4   :  { %v523_v5 = vpop.permute.xlu0 %522  ;;  %v519_v31 = vpop.permute.xlu1 %518 }
  0xb5   :  { %v526_v32 = vsel %vm524_vm10, %v521_v28, %v523_v5  ;;  %v525_v33 = vsel %vm524_vm10, %v519_v31, %v521_v28  ;;  %3559 = vmatmul.mubr.msk.f32.vlgmr.msra.gmra.mrb[0].mxu0 %vm81_vm2, %v3556_v30 }
  0xb6   :  { %v530_v36 = vsel %vm3952_vm7, %v526_v32, 0.0  ;;  %v529_v37 = vsel %vm3966_vm8, %v525_v33, 0.0  ;;  %606 = vmatprep.mubr.f32.mxu0 %v3771_v0 }
  0xb7   :  { %3561 = vmatprep.subr.msk.mxu0 %vm85_vm1, %v530_v36 }
  0xb8   :  { %v1456_v38 = vpop.permute.xlu0 %1455  ;;  %v1458_v39 = vpop.permute.xlu1 %1457  ;;  %3562 = vmatpush1.msk.msra.mxu0 %vm85_vm1, %v529_v37  ;;  %3598 = vmatmul.mubr.msk.f32.vlgmr.msra.gmra.mrb[0].mxu1 %vm81_vm2, %v3595_v34 }
  0xb9   :  { %v1460_v40 = vsel %vm621_vm11, %v1456_v38, %v1458_v39  ;;  %1539 = vmatprep.mubr.f32.mxu1 %v3771_v0 }
  0xba   :  { %v1464_v41 = vsel %vm3915_vm4, %v1460_v40, 0.0 }
  0xbb   :  { %3600 = vmatprep.subr.msk.mxu1 %vm85_vm1, %v1464_v41 }
  0xbc   :  { %v1454_v43 = vpop.permute.xlu0 %1453  ;;  %v618_v44 = vpop.permute.xlu1 %617 }
  0xbd   :  { %v1459_v46 = vsel %vm621_vm11, %v1454_v43, %v1456_v38  ;;  %3563 = vmatmul.mubr.msk.f32.vlgmr.msra.gmra.mrb[0].mxu0 %vm81_vm2, %v3560_v42 }
  0xbe   :  { %v1463_v48 = vsel %vm3932_vm5, %v1459_v46, 0.0  ;;  %703 = vmatprep.mubr.f32.mxu0 %v3771_v0 }
  0xbf   :  { %3601 = vmatpush1.msk.msra.mxu1 %vm85_vm1, %v1463_v48 }
  0xc0   :  { %v620_v49 = vpop.permute.xlu0 %619  ;;  %v616_v50 = vpop.permute.xlu1 %615  ;;  %3602 = vmatmul.mubr.msk.f32.vlgmr.msra.gmra.mrb[0].mxu1 %vm81_vm2, %v3599_v47 }
  0xc1   :  { %v623_v52 = vsel %vm621_vm11, %v618_v44, %v620_v49  ;;  %v622_v53 = vsel %vm621_vm11, %v616_v50, %v618_v44  ;;  %1628 = vmatprep.mubr.f32.mxu1 %v3771_v0 }
  0xc2   :  { %v627_v54 = vsel %vm3915_vm4, %v623_v52, 0.0  ;;  %v626_v55 = vsel %vm3932_vm5, %v622_v53, 0.0 }
  0xc3   :  { %3565 = vmatprep.subr.msk.mxu0 %vm85_vm1, %v627_v54 }
  0xc4   :  { %v1552_v57 = vpop.permute.xlu0 %1551  ;;  %v1554_v58 = vpop.permute.xlu1 %1553  ;;  %3566 = vmatpush1.msk.msra.mxu0 %vm85_vm1, %v626_v55 }
  0xc5   :  { %v1556_v59 = vsel %vm720_vm12, %v1552_v57, %v1554_v58  ;;  %3567 = vmatmul.mubr.msk.f32.vlgmr.msra.gmra.mrb[0].mxu0 %vm81_vm2, %v3564_v56 }
  0xc6   :  { %3604 = vmatprep.subr.msk.mxu1 %vm85_vm1, %v1556_v59  ;;  %794 = vmatprep.mubr.f32.mxu0 %v3771_v0 }
  0xc8   :  { %v1550_v60 = vpop.permute.xlu0 %1549  ;;  %v717_v61 = vpop.permute.xlu1 %716 }
  0xc9   :  { %v1555_v63 = vsel %vm720_vm12, %v1550_v60, %v1552_v57 }
  0xca   :  { %3605 = vmatpush1.msk.msra.mxu1 %vm85_vm1, %v1555_v63 }
  0xcb   :  { %3606 = vmatmul.mubr.msk.f32.vlgmr.msra.gmra.mrb[0].mxu1 %vm81_vm2, %v3603_v62 }
  0xcc   :  { %v719_v4 = vpop.permute.xlu0 %718  ;;  %v715_v7 = vpop.permute.xlu1 %714  ;;  %1723 = vmatprep.mubr.f32.mxu1 %v3771_v0 }
  0xcd   :  { %v722_v9 = vsel %vm720_vm12, %v717_v61, %v719_v4  ;;  %v721_v10 = vsel %vm720_vm12, %v715_v7, %v717_v61 }
  0xce   :  { %3569 = vmatprep.subr.msk.mxu0 %vm85_vm1, %v722_v9 }
  0xcf   :  { %3570 = vmatpush1.msk.msra.mxu0 %vm85_vm1, %v721_v10 }
  0xd0   :  { %v1640_v12 = vpop.permute.xlu0 %1639  ;;  %v1642_v13 = vpop.permute.xlu1 %1641  ;;  %3571 = vmatmul.mubr.msk.f32.vlgmr.msra.gmra.mrb[0].mxu0 %vm81_vm2, %v3568_v11 }
  0xd1   :  { %v1644_v14 = vsel %vm809_vm13, %v1640_v12, %v1642_v13  ;;  %891 = vmatprep.mubr.f32.mxu0 %v3771_v0 }
  0xd2   :  { %v1648_v15 = vsel %vm3952_vm7, %v1644_v14, 0.0 }
  0xd3   :  { %3608 = vmatprep.subr.msk.mxu1 %vm85_vm1, %v1648_v15 }
  0xd4   :  { %v1638_v16 = vpop.permute.xlu0 %1637  ;;  %v806_v17 = vpop.permute.xlu1 %805 }
  0xd5   :  { %v1643_v18 = vsel %vm809_vm13, %v1638_v16, %v1640_v12 }
  0xd6   :  { %v1647_v20 = vsel %vm3966_vm8, %v1643_v18, 0.0 }
  0xd7   :  { %3609 = vmatpush1.msk.msra.mxu1 %vm85_vm1, %v1647_v20 }
  0xd8   :  { %v808_v21 = vpop.permute.xlu0 %807  ;;  %v804_v6 = vpop.permute.xlu1 %803  ;;  %3610 = vmatmul.mubr.msk.f32.vlgmr.msra.gmra.mrb[0].mxu1 %vm81_vm2, %v3607_v19 }
  0xd9   :  { %v811_v23 = vsel %vm809_vm13, %v806_v17, %v808_v21  ;;  %v810_v24 = vsel %vm809_vm13, %v804_v6, %v806_v17  ;;  %2731 = vmatprep.mubr.f32.mxu1 %v3771_v0 }
  0xda   :  { %v815_v8 = vsel %vm3952_vm7, %v811_v23, 0.0  ;;  %v814_v25 = vsel %vm3966_vm8, %v810_v24, 0.0 }
  0xdb   :  { %3573 = vmatprep.subr.msk.mxu0 %vm85_vm1, %v815_v8 }
  0xdc   :  { %3574 = vmatpush1.msk.msra.mxu0 %vm85_vm1, %v814_v25 }
  0xdd   :  { %3575 = vmatmul.mubr.msk.f32.vlgmr.msra.gmra.mrb[0].mxu0 %vm81_vm2, %v3572_v26 }
  0xde   :  { %1888 = vmatprep.mubr.f32.mxu0 %v3771_v0 }
 0x1ab   :  { %v1725_v27 = vpop.f32.mrb[0].mxu1 }
 0x1ac   :  { %v1782_v28 = vmax.f32 %v1725_v27, 0.0  ;;  %v1727_v29 = vpop.f32.mrb[1].mxu1  ;;  %v1739_v3 = vsel %vm85_vm1, %v1725_v27, 0.0 }
 0x1ad   :  { %v1783_v30 = vmax.f32 %v1727_v29, 0.0  ;;  %v1740_v5 = vsel %vm85_vm1, %v1727_v29, 0.0 }
 0x1ae   :  { %v1741_v31 = vadd.f32 %v1740_v5, %v1739_v3 }
 0x1af   :  { %v2630_v32 = vcombine.low %v1782_v28, %v1783_v30 }
 0x1b0   :  { %1742 = vadd.xlane.f32.xlu0 %v1741_v31  ;;  %v893_v33 = vpop.f32.mrb[0].mxu0 }
 0x1b1   :  { %v1732_v34 = vsel %vm85_vm1, %v893_v33, 0.0  ;;  %v895_v36 = vpop.f32.mrb[1].mxu0 }
 0x1b2   :  { %v1733_v37 = vsel %vm85_vm1, %v895_v36, 0.0 }
 0x1b3   :  { %v1734_v38 = vadd.f32 %v1733_v37, %v1732_v34 }
 0x1b5   :  { %1735 = vadd.xlane.f32.xlu1 %v1734_v38 }
 0x23d   :  { %v1743_v39 = vpop.xlane.xlu0 %1742 }
 0x23e   :  { %v1744_v40 = vmul.f32 0.00390625, %v1743_v39 }
 0x240   :  { %v1755_v41 = vsub.f32 %v1725_v27, %v1744_v40  ;;  %v1756_v42 = vsub.f32 %v1727_v29, %v1744_v40 }
 0x242   :  { %v1736_v43 = vpop.xlane.xlu1 %1735  ;;  %v1757_v44 = vmul.f32 %v1755_v41, %v1755_v41  ;;  %v1758_v46 = vmul.f32 %v1756_v42, %v1756_v42 }
 0x243   :  { %v1738_v47 = vmul.f32 0.00390625, %v1736_v43 }
 0x244   :  { %v1759_v48 = vsel %vm85_vm1, %v1757_v44, 0.0  ;;  %v1760_v49 = vsel %vm85_vm1, %v1758_v46, 0.0  ;;  %v1806_v46 = vld [vmem:[%s4464_s1] sm:$0xf] }
 0x245   :  { %v1745_v50 = vsub.f32 %v893_v33, %v1738_v47  ;;  %v1746_v52 = vsub.f32 %v895_v36, %v1738_v47  ;;  %v1761_v53 = vadd.f32 %v1760_v49, %v1759_v48  ;;  %v3611_v36 = vld [vmem:[%s4464_s1 + $0x4] sm:$0xf] }
 0x247   :  { %1762 = vadd.xlane.f32.xlu0 %v1761_v53  ;;  %v1747_v54 = vmul.f32 %v1745_v50, %v1745_v50  ;;  %v1748_v55 = vmul.f32 %v1746_v52, %v1746_v52 }
 0x249   :  { %v1749_v56 = vsel %vm85_vm1, %v1747_v54, 0.0  ;;  %v1750_v57 = vsel %vm85_vm1, %v1748_v55, 0.0 }
 0x24a   :  { %v1751_v58 = vadd.f32 %v1750_v57, %v1749_v56 }
 0x24c   :  { %1752 = vadd.xlane.f32.xlu0 %v1751_v58  ;;  %v3646_v58 = vld [vmem:[%s4464_s1 + $0x4] sm:$0xf] }
 0x2d4   :  { %v1763_v59 = vpop.xlane.xlu0 %1762 }
 0x2d5   :  { %v1764_v60 = vmul.f32 0.003921569, %v1763_v59 }
 0x2d7   :  { %v1767_v61 = vadd.f32 1e-05, %v1764_v60 }
 0x2d9   :  { %3763 = vrsqrt.f32 %v1767_v61  ;;  %v1753_v62 = vpop.xlane.xlu0 %1752  ;;  %vm1770_vm14 = vcmp.eq.f32.partialorder %v1767_v61, inf  ;;  %v1773_v10 = vand.u32 2147483648, %v1767_v61  ;;  %vm1772_vm15 = vcmp.eq.f32.partialorder %v1767_v61, 0.0 }
 0x2da   :  { %v1754_v63 = vmul.f32 0.003921569, %v1753_v62 }
 0x2dc   :  { %v1765_v4 = vadd.f32 1e-05, %v1754_v63 }
 0x2de   :  { %3765 = vrsqrt.f32 %v1765_v4 }
 0x2e3   :  { %v3764_v7 = vpop.eup %3763 }
 0x2e4   :  { %v1769_v9 = vmul.f32 %v3764_v7, %v1767_v61 }
 0x2e6   :  { %v1771_v11 = vsel %vm1770_vm14, %v1767_v61, %v1769_v9 }
 0x2e7   :  { %v1774_v12 = vsel %vm1772_vm15, %v1773_v10, %v1771_v11 }
 0x2e8   :  { %v3766_v13 = vpop.eup %3765 }
 0x2e9   :  { %v1775_v14 = vmul.f32 %v3766_v13, %v1774_v12  ;;  %v2650_v13 = vld [vmem:[%s4464_s1] sm:$0xf] }
 0x2eb   :  { %v1776_v15 = vmul.f32 %v1775_v14, %v1745_v50  ;;  %v1777_v16 = vmul.f32 %v1775_v14, %v1746_v52  ;;  %v3618_v14 = vld [vmem:[%s4464_s1 + $0x8] sm:$0xf] }
 0x2ed   :  { %v1778_v17 = vadd.f32 %v1776_v15, %v1744_v40  ;;  %v1779_v18 = vadd.f32 %v1777_v16, %v1744_v40 }
 0x2ef   :  { %v1780_v19 = vmax.f32 %v1778_v17, 0.0  ;;  %v1781_v20 = vmax.f32 %v1779_v18, 0.0 }
 0x2f1   :  { %v1786_v21 = vcombine.low %v1780_v19, %v1781_v20 }
 0x2f3   :  { %1788 = vst [vmem:[#allocation2 + $0x4] sm:$0xff] %v1786_v21 }
 0x2fa   :  { %v4142_v6 = vld [vmem:[#allocation2 + $0x8] sm:$0xff]  ;;  %v1789_v23 = vld [vmem:[#allocation2] sm:$0xff] }
 0x2fb   :  { %1813 = vrot.lane.b32.xlu0 %v4142_v6, %s3772_s16  ;;  %1809 = vrot.lane.b32.xlu1 %v1789_v23, %s3772_s16  ;;  %2632 = vst [vmem:[#allocation2 + $0x4] sm:$0xff] %v2630_v32  ;;  %v4150_v24 = vcombine.high %v1789_v23, %v1789_v23  ;;  %v2249_v27 = vcombine.high %v4142_v6, %v4142_v6 }
 0x2ff   :  { %1798 = vrot.lane.b32.xlu0 %v4142_v6, %s3773_s17  ;;  %1794 = vrot.lane.b32.xlu1 %v1789_v23, %s3773_s17 }
 0x302   :  { %v4152_v8 = vld [vmem:[#allocation2 + $0x8] sm:$0xff]  ;;  %v2633_v25 = vld [vmem:[#allocation2] sm:$0xff] }
 0x303   :  { %2656 = vrot.lane.b32.xlu0 %v4152_v8, %s3772_s16  ;;  %1811 = vrot.lane.b32.xlu1 %v4150_v24, %s3772_s16  ;;  %v4170_v26 = vcombine.high %v2633_v25, %v2633_v25  ;;  %v3089_v28 = vcombine.high %v4152_v8, %v4152_v8 }
 0x307   :  { %2638 = vrot.lane.b32.xlu0 %v2633_v25, %s3773_s17  ;;  %1796 = vrot.lane.b32.xlu1 %v4150_v24, %s3773_s17 }
 0x30b   :  { %2818 = vrot.lane.b32.xlu0 %v2633_v25, %s3774_s2  ;;  %2652 = vrot.lane.b32.xlu1 %v2633_v25, %s3772_s16 }
 0x30f   :  { %1979 = vrot.lane.b32.xlu0 %v4142_v6, %s3774_s2  ;;  %2642 = vrot.lane.b32.xlu1 %v4152_v8, %s3773_s17 }
 0x313   :  { %2913 = vrot.lane.b32.xlu0 %v2633_v25, %s3775_s18  ;;  %2822 = vrot.lane.b32.xlu1 %v4152_v8, %s3774_s2 }
 0x317   :  { %2640 = vrot.lane.b32.xlu0 %v4170_v26, %s3773_s17  ;;  %2654 = vrot.lane.b32.xlu1 %v4170_v26, %s3772_s16 }
 0x31b   :  { %2075 = vrot.lane.b32.xlu0 %v4142_v6, %s3775_s18  ;;  %1977 = vrot.lane.b32.xlu1 %v4150_v24, %s3774_s2 }
 0x31f   :  { %2820 = vrot.lane.b32.xlu0 %v4170_v26, %s3774_s2  ;;  %1975 = vrot.lane.b32.xlu1 %v1789_v23, %s3774_s2 }
 0x323   :  { %3092 = vrot.lane.b32.xlu0 %v4152_v8, %s3776_s19  ;;  %2917 = vrot.lane.b32.xlu1 %v4152_v8, %s3775_s18 }
 0x327   :  { %2915 = vrot.lane.b32.xlu0 %v4170_v26, %s3775_s18  ;;  %2073 = vrot.lane.b32.xlu1 %v4150_v24, %s3775_s18 }
 0x32b   :  { %2254 = vrot.lane.b32.xlu0 %v2249_v27, %s3776_s19  ;;  %2071 = vrot.lane.b32.xlu1 %v1789_v23, %s3775_s18 }
 0x32f   :  { %3187 = vrot.lane.b32.xlu0 %v4152_v8, %s3777_s20  ;;  %2252 = vrot.lane.b32.xlu1 %v4142_v6, %s3776_s19 }
 0x333   :  { %2350 = vrot.lane.b32.xlu0 %v2249_v27, %s3777_s20  ;;  %2250 = vrot.lane.b32.xlu1 %v4150_v24, %s3776_s19 }
 0x337   :  { %3090 = vrot.lane.b32.xlu0 %v4170_v26, %s3776_s19  ;;  %2348 = vrot.lane.b32.xlu1 %v4142_v6, %s3777_s20 }
 0x33b   :  { %3283 = vrot.lane.b32.xlu0 %v4152_v8, %s3778_s21  ;;  %3094 = vrot.lane.b32.xlu1 %v3089_v28, %s3776_s19 }
 0x33f   :  { %3185 = vrot.lane.b32.xlu0 %v4170_v26, %s3777_s20  ;;  %2346 = vrot.lane.b32.xlu1 %v4150_v24, %s3777_s20 }
 0x343   :  { %2448 = vrot.lane.b32.xlu0 %v2249_v27, %s3778_s21  ;;  %3189 = vrot.lane.b32.xlu1 %v3089_v28, %s3777_s20 }
 0x347   :  { %3281 = vrot.lane.b32.xlu0 %v4170_v26, %s3778_s21  ;;  %2446 = vrot.lane.b32.xlu1 %v4142_v6, %s3778_s21 }
 0x34b   :  { %3371 = vrot.lane.b32.xlu0 %v4152_v8, %s3779_s22  ;;  %2444 = vrot.lane.b32.xlu1 %v4150_v24, %s3778_s21 }
 0x34f   :  { %3369 = vrot.lane.b32.xlu0 %v4170_v26, %s3779_s22  ;;  %3285 = vrot.lane.b32.xlu1 %v3089_v28, %s3778_s21 }
 0x353   :  { %2536 = vrot.lane.b32.xlu0 %v2249_v27, %s3779_s22  ;;  %3373 = vrot.lane.b32.xlu1 %v3089_v28, %s3779_s22  ;;  %v3653_v28 = vld [vmem:[%s4464_s1 + $0x8] sm:$0xf] }
 0x357   :  { %2534 = vrot.lane.b32.xlu1 %v4142_v6, %s3779_s22 }
 0x35b   :  { %2532 = vrot.lane.b32.xlu1 %v4150_v24, %s3779_s22 }
 0x36d   :  { %v1814_v29 = vpop.permute.xlu0 %1813  ;;  %v1810_v3 = vpop.permute.xlu1 %1809 }
 0x371   :  { %v1799_v30 = vpop.permute.xlu0 %1798  ;;  %v1795_v5 = vpop.permute.xlu1 %1794 }
 0x375   :  { %v2657_v31 = vpop.permute.xlu0 %2656  ;;  %v1812_v32 = vpop.permute.xlu1 %1811 }
 0x376   :  { %v1815_v33 = vsel %vm78_vm0, %v1810_v3, %v1812_v32  ;;  %v1816_v34 = vsel %vm78_vm0, %v1812_v32, %v1814_v29 }
 0x377   :  { %3612 = vmatprep.subr.msk.mxu0 %vm85_vm1, %v1816_v34 }
 0x378   :  { %3613 = vmatpush1.msk.msra.mxu0 %vm85_vm1, %v1815_v33  ;;  %v3622_v33 = vld [vmem:[%s4464_s1 + $0xc] sm:$0xf] }
 0x379   :  { %v2639_v37 = vpop.permute.xlu0 %2638  ;;  %v1797_v38 = vpop.permute.xlu1 %1796  ;;  %3614 = vmatmul.mubr.msk.f32.vlgmr.msra.gmra.mrb[2].mxu0 %vm81_vm2, %v3611_v36 }
 0x37a   :  { %v1800_v39 = vsel %vm62_vm3, %v1795_v5, %v1797_v38  ;;  %v1801_v40 = vsel %vm62_vm3, %v1797_v38, %v1799_v30  ;;  %1968 = vmatprep.mubr.f32.mxu0 %v3771_v0 }
 0x37b   :  { %v1804_v41 = vsel %vm3932_vm5, %v1800_v39, 0.0  ;;  %v1805_v42 = vsel %vm3915_vm4, %v1801_v40, 0.0  ;;  %v3657_v39 = vld [vmem:[%s4464_s1 + $0xc] sm:$0xf] }
 0x37c   :  { %3615 = vmatprep.subr.msk.mxu0 %vm85_vm1, %v1805_v42 }
 0x37d   :  { %v2819_v43 = vpop.permute.xlu0 %2818  ;;  %3616 = vmatpush1.msk.msra.mxu0 %vm85_vm1, %v1804_v41  ;;  %v2653_v44 = vpop.permute.xlu1 %2652  ;;  %v3626_v41 = vld [vmem:[%s4464_s1 + $0x10] sm:$0xf] }
 0x381   :  { %v1980_v47 = vpop.permute.xlu0 %1979  ;;  %v2643_v48 = vpop.permute.xlu1 %2642  ;;  %3617 = vmatmul.mubr.msk.f32.vlgmr.msra.gmra.mrb[2].mxu0 %vm81_vm2, %v1806_v46 }
 0x382   :  { %2062 = vmatprep.mubr.f32.mxu0 %v3771_v0 }
 0x385   :  { %v2914_v49 = vpop.permute.xlu0 %2913  ;;  %v2823_v50 = vpop.permute.xlu1 %2822 }
 0x389   :  { %v2641_v52 = vpop.permute.xlu0 %2640  ;;  %v2655_v53 = vpop.permute.xlu1 %2654 }
 0x38a   :  { %v2644_v54 = vsel %vm62_vm3, %v2639_v37, %v2641_v52  ;;  %v2645_v55 = vsel %vm62_vm3, %v2641_v52, %v2643_v48  ;;  %v2658_v56 = vsel %vm78_vm0, %v2653_v44, %v2655_v53  ;;  %v2659_v57 = vsel %vm78_vm0, %v2655_v53, %v2657_v31  ;;  %v3630_v53 = vld [vmem:[%s4464_s1 + $0x14] sm:$0xf] }
 0x38b   :  { %v2649_v59 = vsel %vm3915_vm4, %v2645_v55, 0.0  ;;  %3647 = vmatprep.subr.msk.mxu1 %vm85_vm1, %v2659_v57  ;;  %v2648_v60 = vsel %vm3932_vm5, %v2644_v54, 0.0 }
 0x38c   :  { %3648 = vmatpush1.msk.msra.mxu1 %vm85_vm1, %v2658_v56 }
 0x38d   :  { %v2076_v61 = vpop.permute.xlu0 %2075  ;;  %3649 = vmatmul.mubr.msk.f32.vlgmr.msra.gmra.mrb[2].mxu1 %vm81_vm2, %v3646_v58  ;;  %3650 = vmatprep.subr.msk.mxu1 %vm85_vm1, %v2649_v59  ;;  %v1978_v62 = vpop.permute.xlu1 %1977  ;;  %v3665_v59 = vld [vmem:[%s4464_s1 + $0x14] sm:$0xf] }
 0x38e   :  { %v1982_v63 = vsel %vm247_vm6, %v1978_v62, %v1980_v47  ;;  %3651 = vmatpush1.msk.msra.mxu1 %vm85_vm1, %v2648_v60  ;;  %2811 = vmatprep.mubr.f32.mxu1 %v3771_v0 }
 0x38f   :  { %v1986_v4 = vsel %vm3952_vm7, %v1982_v63, 0.0 }
 0x390   :  { %3619 = vmatprep.subr.msk.mxu0 %vm85_vm1, %v1986_v4 }
 0x391   :  { %v2821_v7 = vpop.permute.xlu0 %2820  ;;  %v1976_v9 = vpop.permute.xlu1 %1975 }
 0x392   :  { %v2824_v10 = vsel %vm247_vm6, %v2819_v43, %v2821_v7  ;;  %v2825_v11 = vsel %vm247_vm6, %v2821_v7, %v2823_v50  ;;  %v1981_v12 = vsel %vm247_vm6, %v1976_v9, %v1978_v62  ;;  %v3634_v7 = vld [vmem:[%s4464_s1 + $0x18] sm:$0xf] }
 0x393   :  { %v2828_v15 = vsel %vm3966_vm8, %v2824_v10, 0.0  ;;  %v2829_v16 = vsel %vm3952_vm7, %v2825_v11, 0.0  ;;  %v1985_v17 = vsel %vm3966_vm8, %v1981_v12, 0.0 }
 0x394   :  { %3620 = vmatpush1.msk.msra.mxu0 %vm85_vm1, %v1985_v17  ;;  %3654 = vmatprep.subr.msk.mxu1 %vm85_vm1, %v2829_v16  ;;  %v3638_v16 = vld [vmem:[%s4464_s1 + $0x1c] sm:$0xf] }
 0x395   :  { %v3093_v18 = vpop.permute.xlu0 %3092  ;;  %3652 = vmatmul.mubr.msk.f32.vlgmr.msra.gmra.mrb[2].mxu1 %vm81_vm2, %v2650_v13  ;;  %v2918_v19 = vpop.permute.xlu1 %2917  ;;  %3621 = vmatmul.mubr.msk.f32.vlgmr.msra.gmra.mrb[2].mxu0 %vm81_vm2, %v3618_v14  ;;  %v3669_v14 = vld [vmem:[%s4464_s1 + $0x18] sm:$0xf] }
 0x396   :  { %3655 = vmatpush1.msk.msra.mxu1 %vm85_vm1, %v2828_v15  ;;  %2904 = vmatprep.mubr.f32.mxu1 %v3771_v0 }
 0x397   :  { %2158 = vmatprep.mubr.f32.mxu0 %v3771_v0 }
 0x399   :  { %v2916_v20 = vpop.permute.xlu0 %2915  ;;  %v2074_v21 = vpop.permute.xlu1 %2073 }
 0x39a   :  { %v2919_v23 = vsel %vm344_vm9, %v2914_v49, %v2916_v20  ;;  %v2920_v25 = vsel %vm344_vm9, %v2916_v20, %v2918_v19  ;;  %v2078_v27 = vsel %vm344_vm9, %v2074_v21, %v2076_v61  ;;  %v3673_v20 = vld [vmem:[%s4464_s1 + $0x1c] sm:$0xf] }
 0x39b   :  { %v2923_v29 = vsel %vm3932_vm5, %v2919_v23, 0.0  ;;  %v2924_v3 = vsel %vm3915_vm4, %v2920_v25, 0.0  ;;  %v2082_v30 = vsel %vm3915_vm4, %v2078_v27, 0.0 }
 0x39c   :  { %3623 = vmatprep.subr.msk.mxu0 %vm85_vm1, %v2082_v30  ;;  %3658 = vmatprep.subr.msk.mxu1 %vm85_vm1, %v2924_v3 }
 0x39d   :  { %v2255_v5 = vpop.permute.xlu0 %2254  ;;  %3656 = vmatmul.mubr.msk.f32.vlgmr.msra.gmra.mrb[2].mxu1 %vm81_vm2, %v3653_v28  ;;  %v2072_v31 = vpop.permute.xlu1 %2071 }
 0x39e   :  { %3659 = vmatpush1.msk.msra.mxu1 %vm85_vm1, %v2923_v29  ;;  %v2077_v32 = vsel %vm344_vm9, %v2072_v31, %v2074_v21  ;;  %2999 = vmatprep.mubr.f32.mxu1 %v3771_v0  ;;  %v3677_v31 = vld [vmem:[%s4464_s1 + $0x20] sm:$0xf] }
 0x39f   :  { %v2081_v34 = vsel %vm3932_vm5, %v2077_v32, 0.0  ;;  %3662 = vmatprep.subr.msk.mxu1 %vm85_vm1, %v4152_v8 }
 0x3a0   :  { %3624 = vmatpush1.msk.msra.mxu0 %vm85_vm1, %v2081_v34  ;;  %v3642_v34 = vld [vmem:[%s4464_s1 + $0x20] sm:$0xf] }
 0x3a1   :  { %v3188_v36 = vpop.permute.xlu0 %3187  ;;  %3625 = vmatmul.mubr.msk.f32.vlgmr.msra.gmra.mrb[2].mxu0 %vm81_vm2, %v3622_v33  ;;  %3627 = vmatprep.subr.msk.mxu0 %vm85_vm1, %v4142_v6  ;;  %v2253_v37 = vpop.permute.xlu1 %2252 }
 0x3a2   :  { %v2257_v38 = vsel %vm524_vm10, %v2253_v37, %v2255_v5  ;;  %3628 = vmatpush1.msk.msra.mxu0 %vm85_vm1, %v4150_v24  ;;  %2240 = vmatprep.mubr.f32.mxu0 %v3771_v0 }
 0x3a3   :  { %v2261_v8 = vsel %vm3952_vm7, %v2257_v38, 0.0 }
 0x3a4   :  { %3631 = vmatprep.subr.msk.mxu0 %vm85_vm1, %v2261_v8 }
 0x3a5   :  { %v2351_v40 = vpop.permute.xlu0 %2350  ;;  %3660 = vmatmul.mubr.msk.f32.vlgmr.msra.gmra.mrb[2].mxu1 %vm81_vm2, %v3657_v39  ;;  %v2251_v6 = vpop.permute.xlu1 %2250 }
 0x3a6   :  { %3663 = vmatpush1.msk.msra.mxu1 %vm85_vm1, %v4170_v26  ;;  %v2256_v24 = vsel %vm524_vm10, %v2251_v6, %v2253_v37  ;;  %3080 = vmatprep.mubr.f32.mxu1 %v3771_v0  ;;  %v3661_v26 = vld [vmem:[%s4464_s1 + $0x10] sm:$0xf] }
 0x3a7   :  { %v2260_v42 = vsel %vm3966_vm8, %v2256_v24, 0.0 }
 0x3a9   :  { %v3091_v43 = vpop.permute.xlu0 %3090  ;;  %3629 = vmatmul.mubr.msk.f32.vlgmr.msra.gmra.mrb[2].mxu0 %vm81_vm2, %v3626_v41  ;;  %v2349_v44 = vpop.permute.xlu1 %2348 }
 0x3aa   :  { %3632 = vmatpush1.msk.msra.mxu0 %vm85_vm1, %v2260_v42  ;;  %v2353_v46 = vsel %vm621_vm11, %v2349_v44, %v2351_v40  ;;  %2337 = vmatprep.mubr.f32.mxu0 %v3771_v0  ;;  %v3096_v48 = vsel %vm524_vm10, %v3091_v43, %v3093_v18 }
 0x3ab   :  { %v2357_v47 = vsel %vm3915_vm4, %v2353_v46, 0.0  ;;  %v3100_v55 = vsel %vm3966_vm8, %v3096_v48, 0.0 }
 0x3ac   :  { %3635 = vmatprep.subr.msk.mxu0 %vm85_vm1, %v2357_v47 }
 0x3ad   :  { %v3284_v49 = vpop.permute.xlu0 %3283  ;;  %3664 = vmatmul.mubr.msk.f32.vlgmr.msra.gmra.mrb[2].mxu1 %vm81_vm2, %v3661_v26  ;;  %v3095_v50 = vpop.permute.xlu1 %3094 }
 0x3ae   :  { %v3097_v52 = vsel %vm524_vm10, %v3093_v18, %v3095_v50  ;;  %3176 = vmatprep.mubr.f32.mxu1 %v3771_v0 }
 0x3af   :  { %v3101_v54 = vsel %vm3952_vm7, %v3097_v52, 0.0 }
 0x3b0   :  { %3666 = vmatprep.subr.msk.mxu1 %vm85_vm1, %v3101_v54 }
 0x3b1   :  { %v3186_v56 = vpop.permute.xlu0 %3185  ;;  %3667 = vmatpush1.msk.msra.mxu1 %vm85_vm1, %v3100_v55  ;;  %v2347_v57 = vpop.permute.xlu1 %2346  ;;  %3633 = vmatmul.mubr.msk.f32.vlgmr.msra.gmra.mrb[2].mxu0 %vm81_vm2, %v3630_v53 }
 0x3b2   :  { %v2352_v58 = vsel %vm621_vm11, %v2347_v57, %v2349_v44  ;;  %2433 = vmatprep.mubr.f32.mxu0 %v3771_v0  ;;  %v3191_v61 = vsel %vm621_vm11, %v3186_v56, %v3188_v36 }
 0x3b3   :  { %v2356_v60 = vsel %vm3932_vm5, %v2352_v58, 0.0  ;;  %v3195_v10 = vsel %vm3932_vm5, %v3191_v61, 0.0 }
 0x3b4   :  { %3636 = vmatpush1.msk.msra.mxu0 %vm85_vm1, %v2356_v60 }
 0x3b5   :  { %v2449_v62 = vpop.permute.xlu0 %2448  ;;  %3668 = vmatmul.mubr.msk.f32.vlgmr.msra.gmra.mrb[2].mxu1 %vm81_vm2, %v3665_v59  ;;  %v3190_v63 = vpop.permute.xlu1 %3189 }
 0x3b6   :  { %v3192_v4 = vsel %vm621_vm11, %v3188_v36, %v3190_v63  ;;  %3271 = vmatprep.mubr.f32.mxu1 %v3771_v0 }
 0x3b7   :  { %v3196_v9 = vsel %vm3915_vm4, %v3192_v4, 0.0 }
 0x3b8   :  { %3670 = vmatprep.subr.msk.mxu1 %vm85_vm1, %v3196_v9 }
 0x3b9   :  { %v3282_v11 = vpop.permute.xlu0 %3281  ;;  %3671 = vmatpush1.msk.msra.mxu1 %vm85_vm1, %v3195_v10  ;;  %v2447_v12 = vpop.permute.xlu1 %2446  ;;  %3637 = vmatmul.mubr.msk.f32.vlgmr.msra.gmra.mrb[2].mxu0 %vm81_vm2, %v3634_v7 }
 0x3ba   :  { %v2451_v13 = vsel %vm720_vm12, %v2447_v12, %v2449_v62  ;;  %2523 = vmatprep.mubr.f32.mxu0 %v3771_v0  ;;  %v3287_v21 = vsel %vm720_vm12, %v3282_v11, %v3284_v49 }
 0x3bb   :  { %3639 = vmatprep.subr.msk.mxu0 %vm85_vm1, %v2451_v13 }
 0x3bd   :  { %v3372_v22 = vpop.permute.xlu0 %3371  ;;  %3672 = vmatmul.mubr.msk.f32.vlgmr.msra.gmra.mrb[2].mxu1 %vm81_vm2, %v3669_v14  ;;  %v2445_v35 = vpop.permute.xlu1 %2444 }
 0x3be   :  { %v2450_v15 = vsel %vm720_vm12, %v2445_v35, %v2447_v12  ;;  %3360 = vmatprep.mubr.f32.mxu1 %v3771_v0 }
 0x3bf   :  { %3640 = vmatpush1.msk.msra.mxu0 %vm85_vm1, %v2450_v15 }
 0x3c1   :  { %v3286_v17 = vpop.permute.xlu1 %3285  ;;  %3641 = vmatmul.mubr.msk.f32.vlgmr.msra.gmra.mrb[2].mxu0 %vm81_vm2, %v3638_v16  ;;  %v3370_v18 = vpop.permute.xlu0 %3369 }
 0x3c2   :  { %v3288_v19 = vsel %vm720_vm12, %v3284_v49, %v3286_v17  ;;  %2619 = vmatprep.mubr.f32.mxu0 %v3771_v0  ;;  %v3375_v23 = vsel %vm809_vm13, %v3370_v18, %v3372_v22 }
 0x3c3   :  { %3674 = vmatprep.subr.msk.mxu1 %vm85_vm1, %v3288_v19  ;;  %v3379_v29 = vsel %vm3966_vm8, %v3375_v23, 0.0 }
 0x3c4   :  { %3675 = vmatpush1.msk.msra.mxu1 %vm85_vm1, %v3287_v21 }
 0x3c5   :  { %3676 = vmatmul.mubr.msk.f32.vlgmr.msra.gmra.mrb[2].mxu1 %vm81_vm2, %v3673_v20  ;;  %v3374_v25 = vpop.permute.xlu1 %3373  ;;  %v2537_v3 = vpop.permute.xlu0 %2536  ;;  %v3512_v20 = vcombine.high %v3805_v1, %v3805_v1 }
 0x3c6   :  { %v3376_v27 = vsel %vm809_vm13, %v3372_v22, %v3374_v25  ;;  %3455 = vmatprep.mubr.f32.mxu1 %v3771_v0 }
 0x3c7   :  { %v3380_v28 = vsel %vm3952_vm7, %v3376_v27, 0.0 }
 0x3c8   :  { %3678 = vmatprep.subr.msk.mxu1 %vm85_vm1, %v3380_v28 }
 0x3c9   :  { %3679 = vmatpush1.msk.msra.mxu1 %vm85_vm1, %v3379_v29  ;;  %v2535_v30 = vpop.permute.xlu1 %2534 }
 0x3ca   :  { %v2539_v5 = vsel %vm809_vm13, %v2535_v30, %v2537_v3 }
 0x3cb   :  { %v2543_v0 = vsel %vm3952_vm7, %v2539_v5, 0.0 }
 0x3cc   :  { %3643 = vmatprep.subr.msk.mxu0 %vm85_vm1, %v2543_v0 }
 0x3cd   :  { %3680 = vmatmul.mubr.msk.f32.vlgmr.msra.gmra.mrb[2].mxu1 %vm81_vm2, %v3677_v31  ;;  %v2533_v32 = vpop.permute.xlu1 %2532 }
 0x3ce   :  { %v2538_v33 = vsel %vm809_vm13, %v2533_v32, %v2535_v30 }
 0x3cf   :  { %v2542_v36 = vsel %vm3966_vm8, %v2538_v33, 0.0 }
 0x3d0   :  { %3644 = vmatpush1.msk.msra.mxu0 %vm85_vm1, %v2542_v36 }
 0x3d1   :  { %3645 = vmatmul.mubr.msk.f32.vlgmr.msra.gmra.mrb[2].mxu0 %vm81_vm2, %v3642_v34 }
 0x4a0   :  { %v3457_v37 = vpop.f32.mrb[2].mxu1 }
 0x4a1   :  { %v3470_v38 = vsel %vm85_vm1, %v3457_v37, 0.0  ;;  %v3526_v39 = vadd.f32 %v3813_v2, %v3457_v37  ;;  %v3459_v8 = vpop.f32.mrb[3].mxu1 }
 0x4a2   :  { %v3471_v40 = vsel %vm85_vm1, %v3459_v8, 0.0  ;;  %v3527_v6 = vadd.f32 %v3524_v45, %v3459_v8 }
 0x4a3   :  { %v3528_v24 = vmax.f32 %v3526_v39, 0.0  ;;  %v3472_v41 = vadd.f32 %v3471_v40, %v3470_v38 }
 0x4a4   :  { %v3529_v51 = vmax.f32 %v3527_v6, 0.0  ;;  %v2621_v42 = vpop.f32.mrb[2].mxu0 }
 0x4a5   :  { %v3464_v43 = vsel %vm85_vm1, %v2621_v42, 0.0  ;;  %3473 = vadd.xlane.f32.xlu0 %v3472_v41  ;;  %v2623_v44 = vpop.f32.mrb[3].mxu0 }
 0x4a6   :  { %v3532_v46 = vcombine.low %v3528_v24, %v3529_v51  ;;  %v3465_v26 = vsel %vm85_vm1, %v2623_v44, 0.0 }
 0x4a7   :  { %v3466_v47 = vadd.f32 %v3465_v26, %v3464_v43 }
 0x4a8   :  { %3681 = vst [vmem:[%s4465_s3 + $0x8] sm:$0xff] %v3532_v46 }
 0x4a9   :  { %3467 = vadd.xlane.f32.xlu1 %v3466_v47 }
 0x532   :  { %v3474_v2 = vpop.xlane.xlu0 %3473 }
 0x533   :  { %v3475_v48 = vmul.f32 0.00390625, %v3474_v2 }
 0x535   :  { %v3486_v49 = vsub.f32 %v3457_v37, %v3475_v48  ;;  %v3487_v50 = vsub.f32 %v3459_v8, %v3475_v48 }
 0x536   :  { %v3468_v52 = vpop.xlane.xlu1 %3467 }
 0x537   :  { %v3469_v53 = vmul.f32 0.00390625, %v3468_v52  ;;  %v3488_v54 = vmul.f32 %v3486_v49, %v3486_v49  ;;  %v3489_v55 = vmul.f32 %v3487_v50, %v3487_v50 }
 0x539   :  { %v3476_v56 = vsub.f32 %v2621_v42, %v3469_v53  ;;  %v3477_v57 = vsub.f32 %v2623_v44, %v3469_v53  ;;  %v3490_v58 = vsel %vm85_vm1, %v3488_v54, 0.0  ;;  %v3491_v59 = vsel %vm85_vm1, %v3489_v55, 0.0 }
 0x53a   :  { %v3492_v60 = vadd.f32 %v3491_v59, %v3490_v58 }
 0x53b   :  { %v3478_v61 = vmul.f32 %v3476_v56, %v3476_v56  ;;  %v3479_v62 = vmul.f32 %v3477_v57, %v3477_v57 }
 0x53c   :  { %3493 = vadd.xlane.f32.xlu0 %v3492_v60 }
 0x53d   :  { %v3480_v63 = vsel %vm85_vm1, %v3478_v61, 0.0  ;;  %v3481_v4 = vsel %vm85_vm1, %v3479_v62, 0.0 }
 0x53e   :  { %v3482_v7 = vadd.f32 %v3481_v4, %v3480_v63 }
 0x540   :  { %3483 = vadd.xlane.f32.xlu0 %v3482_v7 }
 0x5c9   :  { %v3494_v9 = vpop.xlane.xlu0 %3493 }
 0x5ca   :  { %v3495_v10 = vmul.f32 0.003921569, %v3494_v9 }
 0x5cc   :  { %v3498_v11 = vadd.f32 1e-05, %v3495_v10 }
 0x5cd   :  { %v3484_v12 = vpop.xlane.xlu0 %3483 }
 0x5ce   :  { %3767 = vrsqrt.f32 %v3498_v11  ;;  %v3485_v13 = vmul.f32 0.003921569, %v3484_v12  ;;  %vm3501_vm0 = vcmp.eq.f32.partialorder %v3498_v11, inf  ;;  %v3504_v15 = vand.u32 2147483648, %v3498_v11 }
 0x5cf   :  { %vm3503_vm2 = vcmp.eq.f32.partialorder %v3498_v11, 0.0 }
 0x5d0   :  { %v3496_v14 = vadd.f32 1e-05, %v3485_v13 }
 0x5d2   :  { %3769 = vrsqrt.f32 %v3496_v14 }
 0x5d8   :  { %v3768_v22 = vpop.eup %3767 }
 0x5d9   :  { %v3500_v35 = vmul.f32 %v3768_v22, %v3498_v11 }
 0x5db   :  { %v3502_v16 = vsel %vm3501_vm0, %v3498_v11, %v3500_v35 }
 0x5dc   :  { %v3505_v17 = vsel %vm3503_vm2, %v3504_v15, %v3502_v16  ;;  %v3770_v18 = vpop.eup %3769 }
 0x5dd   :  { %v3506_v19 = vmul.f32 %v3770_v18, %v3505_v17 }
 0x5df   :  { %v3507_v21 = vmul.f32 %v3506_v19, %v3476_v56  ;;  %v3508_v23 = vmul.f32 %v3506_v19, %v3477_v57 }
 0x5e1   :  { %v3509_v25 = vadd.f32 %v3507_v21, %v3475_v48  ;;  %v3510_v27 = vadd.f32 %v3508_v23, %v3475_v48 }
 0x5e3   :  { %v3514_v28 = vadd.f32 %v3509_v25, %v3805_v1  ;;  %v3515_v29 = vadd.f32 %v3512_v20, %v3510_v27 }
 0x5e5   :  { %v3516_v3 = vmax.f32 %v3514_v28, 0.0  ;;  %v3517_v30 = vmax.f32 %v3515_v29, 0.0 }
 0x5e7   :  { %v3520_v5 = vcombine.low %v3516_v3, %v3517_v30 }
 0x5e9   :  { %3522 = vst [vmem:[%s4465_s3] sm:$0xff] %v3520_v5 }

</bundles_post_ra>
